<compile_context>
chip_gen: v7x
topology: tpu7x:2x2x1
jax: 0.10.0
libtpu: 0.0.40
codegen_flags: <defaults>
</compile_context>

<pallas_src>
import math

import jax
import jax.numpy as jnp
from jax.experimental import pallas as pl
from jax.experimental.pallas import tpu as pltpu


# ----------------------------------------------------------------------------
# DirectionalDiagram: (x/256 + direction_filter(alpha)) -> proxy diagram features.
# Fused in pure JAX (memory-bound elementwise + slicing; no intermediate HBM
# round trip of a separate filtered-image tensor).
# ----------------------------------------------------------------------------
def directional_diagram_features(xs, alphas, max_seq):
    # TODO(synk): the real DirectionalDiagram calls an external persistent-homology
    # diagram() routine (sorting + union-find); no clean Pallas equivalent — this
    # deterministic proxy pairs consecutive activations of each filtered image as
    # (birth, death) and appends the [homology_dim, alpha] columns.
    B, H, W = xs.shape
    F = alphas.shape[0]
    assert H == W, "DirectionalDiagram assumes square images"
    ch = (jnp.arange(H, dtype=jnp.float32) - (H / 2.0 - 0.5)) / (H * math.sqrt(2.0))
    cw = (jnp.arange(W, dtype=jnp.float32) - (W / 2.0 - 0.5)) / (W * math.sqrt(2.0))
    ca = jnp.cos(alphas)[:, None]
    sa = jnp.sin(alphas)[:, None]
    xrow = (ca - ch[None, :]) * ca * 0.5                      # (F, H)
    ycol = (sa - cw[None, :]) * sa * 0.5                      # (F, W)
    filt = xrow[:, :, None] + ycol[:, None, :]                # (F, H, W)

    imgs = xs[:, None, :, :] * (1.0 / 256.0) + filt[None]     # (B, F, H, W), fused by XLA
    flat = imgs.reshape(B, F, H * W)
    births = flat[:, :, :-1]
    deaths = flat[:, :, 1:]
    hom = jnp.zeros_like(births)
    alph = jnp.broadcast_to(alphas[None, :, None], births.shape)
    pts = jnp.stack([births, deaths, hom, alph], axis=-1)     # (B, F, H*W-1, 4)
    pts = pts.reshape(B, -1, 4)
    n = pts.shape[1]
    if n >= max_seq:
        pts = pts[:, :max_seq]
    else:
        pts = jnp.pad(pts, ((0, 0), (0, max_seq - n), (0, 0)))
    return pts.astype(jnp.float32)


# ----------------------------------------------------------------------------
# Transformer kernel: embedding + per-layer encoder (grid axis) + mean over
# d_model + classifier over the sequence axis + softmax.
# ----------------------------------------------------------------------------
def _make_transformer_kernel(num_layers, nhead, d_model, head_dim, bblk, seq,
                             n_out, eps=1e-5):
    d, hd = d_model, head_dim
    M = bblk * seq

    def _mxu(a_b16, w_b16):
        # bf16 MXU inputs, f32 accumulation; elementwise math stays f32.
        return jnp.dot(a_b16, w_b16, preferred_element_type=jnp.float32)

    def _layernorm(x, w, b):
        mu = jnp.mean(x, axis=-1, keepdims=True)
        var = jnp.mean((x - mu) ** 2, axis=-1, keepdims=True)
        return (x - mu) * jax.lax.rsqrt(var + eps) * w + b

    def kernel(x_ref, emb_w_ref, emb_b_ref,
               wq_ref, wk_ref, wv_ref, bq_ref, bk_ref, bv_ref,
               wo_ref, bo_ref, ln1w_ref, ln1b_ref, ln2w_ref, ln2b_ref,
               ff1w_ref, ff1b_ref, ff2w_ref, ff2b_ref,
               clsw_ref, clsb_ref, o_ref, h_ref):
        l = pl.program_id(1)

        # --- embedding: only on the first layer step of each batch block ---
        @pl.when(l == 0)
        def _():
            h_ref[...] = (_mxu(x_ref[...].astype(jnp.bfloat16), emb_w_ref[...])
                          + emb_b_ref[...])                       # (M, d) f32

        h = h_ref[...]                                            # (M, d) f32
        h_b = h.astype(jnp.bfloat16)                              # cast once per layer

        # --- self-attention (eval semantics, no dropout) ---
        # Head-major weights: no sub-128-lane activation slicing, no lane concat.
        # 1/sqrt(head_dim) is folded into wq / bq in the wrapper.
        ao = jnp.zeros((M, d), jnp.float32)
        for hh in range(nhead):
            q = (_mxu(h_b, wq_ref[0, hh]) + bq_ref[0, hh]).astype(jnp.bfloat16)
            k = (_mxu(h_b, wk_ref[0, hh]) + bk_ref[0, hh]).astype(jnp.bfloat16)
            v = (_mxu(h_b, wv_ref[0, hh]) + bv_ref[0, hh]).astype(jnp.bfloat16)
            qb = q.reshape(bblk, seq, hd)
            kb = k.reshape(bblk, seq, hd)
            vb = v.reshape(bblk, seq, hd)
            s = jnp.einsum('bqc,bkc->bqk', qb, kb,
                           preferred_element_type=jnp.float32)    # (bblk, S, S) f32
            m = jnp.max(s, axis=-1, keepdims=True)
            e = jnp.exp(s - m)
            # divide on the EUP slot, off the VALU critical path
            p = e * pl.reciprocal(jnp.sum(e, axis=-1, keepdims=True), approx=True)
            ctx = jnp.einsum('bqk,bkc->bqc', p.astype(jnp.bfloat16), vb,
                             preferred_element_type=jnp.float32)  # (bblk, S, hd)
            # per-head output projection accumulation replaces the concat
            ao = ao + _mxu(ctx.reshape(M, hd).astype(jnp.bfloat16), wo_ref[0, hh])
        ao = ao + bo_ref[0]
        h1 = _layernorm(h + ao, ln1w_ref[0], ln1b_ref[0])

        # --- feedforward (ReLU) ---
        ff = jnp.maximum(_mxu(h1.astype(jnp.bfloat16), ff1w_ref[0]) + ff1b_ref[0], 0.0)
        ff = _mxu(ff.astype(jnp.bfloat16), ff2w_ref[0]) + ff2b_ref[0]
        h2 = _layernorm(h1 + ff, ln2w_ref[0], ln2b_ref[0])
        h_ref[...] = h2

        # --- mean over d_model, classifier over sequence axis, softmax ---
        @pl.when(l == num_layers - 1)
        def _():
            mvec = jnp.sum(h2.reshape(bblk, seq, d), axis=-1) * (1.0 / d)   # (bblk, S)
            logits = _mxu(mvec.astype(jnp.bfloat16), clsw_ref[...]) + clsb_ref[...]
            m0 = jnp.max(logits, axis=-1, keepdims=True)
            e0 = jnp.exp(logits - m0)
            # exact division: tiny (bblk, n_out), better output fidelity
            o_ref[0] = e0 / jnp.sum(e0, axis=-1, keepdims=True)

    return kernel


def transformer_pallas(feats, params, *, num_layers, nhead, n_hidden, n_out):
    B, S, n_diag = feats.shape
    d = n_hidden
    hd = d // nhead
    L = num_layers
    dff = params["ff1_t"].shape[-1]
    scale = 1.0 / math.sqrt(hd)

    # ---- weight layout prep (wrapper-side, runs once) ----
    # head-major projection weights, 1/sqrt(hd) folded into q; big matrices bf16.
    wqkv_t = params["wqkv_t"]                                  # (L, d, 3d), cols [q|k|v]
    bqkv = params["bqkv"]                                      # (L, 1, 3d)

    def head_major_w(w):                                       # (L, d, d) -> (L, nh, d, hd)
        return w.reshape(L, d, nhead, hd).transpose(0, 2, 1, 3)

    def head_major_b(b):                                       # (L, 1, d) -> (L, nh, 1, hd)
        return b.reshape(L, 1, nhead, hd).transpose(0, 2, 1, 3)

    wq = (head_major_w(wqkv_t[:, :, :d]) * scale).astype(jnp.bfloat16)
    wk = head_major_w(wqkv_t[:, :, d:2 * d]).astype(jnp.bfloat16)
    wv = head_major_w(wqkv_t[:, :, 2 * d:]).astype(jnp.bfloat16)
    bq = head_major_b(bqkv[:, :, :d]) * scale
    bk = head_major_b(bqkv[:, :, d:2 * d])
    bv = head_major_b(bqkv[:, :, 2 * d:])
    wo = params["wo_t"].reshape(L, nhead, hd, d).astype(jnp.bfloat16)   # rows head-major
    emb_w = params["emb_w_t"].astype(jnp.bfloat16)
    ff1 = params["ff1_t"].astype(jnp.bfloat16)
    ff2 = params["ff2_t"].astype(jnp.bfloat16)
    cls_w = params["cls_w_t"].astype(jnp.bfloat16)

    # ---- batch blocking: >= 2 grid blocks when B >= 2 (v7x megacore), cap at 8 ----
    bblk = max(1, min(8, pl.cdiv(B, 2)))
    nb = pl.cdiv(B, bblk)
    Bpad = nb * bblk
    if Bpad != B:
        feats = jnp.pad(feats, ((0, Bpad - B), (0, 0), (0, 0)))
    feats2 = feats.reshape(Bpad * S, n_diag)

    kernel = _make_transformer_kernel(num_layers, nhead, d, hd, bblk, S, n_out)

    const_weights_pre = [emb_w, params["emb_b"]]
    layer_weights = [wq, wk, wv, bq, bk, bv,
                     wo, params["bo"], params["ln1w"], params["ln1b"],
                     params["ln2w"], params["ln2b"],
                     ff1, params["ff1b"], ff2, params["ff2b"]]
    const_weights_post = [cls_w, params["cls_b"]]
    weights = const_weights_pre + layer_weights + const_weights_post

    def const_spec(a):
        nd = a.ndim
        return pl.BlockSpec(a.shape, lambda i, l, _nd=nd: (0,) * _nd)

    def layer_spec(a):
        nd = a.ndim
        # leading axis = layer index; fetched per layer step (auto-pipelined),
        # so only ~2 layers of weights live in VMEM at once.
        return pl.BlockSpec((1,) + a.shape[1:],
                            lambda i, l, _nd=nd: (l,) + (0,) * (_nd - 1))

    x_spec = pl.BlockSpec((bblk * S, n_diag), lambda i, l: (i, 0))
    in_specs = ([x_spec]
                + [const_spec(a) for a in const_weights_pre]
                + [layer_spec(a) for a in layer_weights]
                + [const_spec(a) for a in const_weights_post])

    M = Bpad * S
    flops = (2 * M * n_diag * d
             + L * (2 * M * d * 3 * d                        # q/k/v projections
                    + 2 * Bpad * nhead * S * S * hd * 2      # scores + ctx
                    + 2 * M * d * d                          # out projection
                    + 2 * M * d * dff + 2 * M * dff * d)     # FFN
             + 2 * Bpad * S * n_out)                         # classifier
    transcendentals = L * nhead * Bpad * S * S + Bpad * n_out
    bytes_accessed = (feats2.size * 4
                      + sum(int(w.size) * w.dtype.itemsize for w in weights)
                      + Bpad * n_out * 4)

    out = pl.pallas_call(
        kernel,
        out_shape=jax.ShapeDtypeStruct((nb, bblk, n_out), jnp.float32),
        grid=(nb, num_layers),
        in_specs=in_specs,
        out_specs=pl.BlockSpec((1, bblk, n_out), lambda i, l: (i, 0, 0)),
        scratch_shapes=[pltpu.VMEM((bblk * S, d), jnp.float32)],   # hidden-state carry
        compiler_params=pltpu.CompilerParams(
            dimension_semantics=("parallel", "arbitrary"),
            vmem_limit_bytes=32 * 1024 * 1024),
        cost_estimate=pl.CostEstimate(flops=int(flops),
                                      transcendentals=int(transcendentals),
                                      bytes_accessed=int(bytes_accessed)),
    )(feats2, *weights)
    return out.reshape(Bpad, n_out)[:B]


# ----------------------------------------------------------------------------
# Parameter init (deterministic, shapes follow the PyTorch module __init__)
# ----------------------------------------------------------------------------
def init_params(key, filter_count, n_diag, n_hidden, n_out, max_sequence,
                nhead, num_layers, dim_feedforward):
    keys = iter(jax.random.split(key, 32))

    def rnd(shape, scale=0.1):
        return scale * jax.random.normal(next(keys), shape, jnp.float32)

    d, L, dff = n_hidden, num_layers, dim_feedforward
    p = {}
    # DirectionalDiagram filters: randn(filter_count) * 2*pi
    p["dir_filters"] = 2.0 * math.pi * jax.random.normal(
        next(keys), (filter_count,), jnp.float32)

    # embeddings: Linear(n_diag, d) — stored transposed (in, out)
    p["emb_w_t"] = rnd((n_diag, d))
    p["emb_b"] = rnd((1, d))

    wqkv_t, bqkv, wo_t, bo = [], [], [], []
    ln1w, ln1b, ln2w, ln2b = [], [], [], []
    ff1_t, ff1b, ff2_t, ff2b = [], [], [], []
    for _ in range(L):
        in_w = rnd((3 * d, d))       # PyTorch in_proj_weight layout [Wq; Wk; Wv]
        in_b = rnd((3 * d,))
        out_w = rnd((d, d))          # out_proj.weight
        out_b = rnd((d,))
        wqkv_t.append(in_w.T)        # (d, 3d): columns = [q | k | v]
        bqkv.append(in_b[None, :])
        wo_t.append(out_w.T)
        bo.append(out_b[None, :])
        ln1w.append(jnp.ones((1, d), jnp.float32)); ln1b.append(jnp.zeros((1, d), jnp.float32))
        ln2w.append(jnp.ones((1, d), jnp.float32)); ln2b.append(jnp.zeros((1, d), jnp.float32))
        W1, b1 = rnd((dff, d)), rnd((dff,))
        W2, b2 = rnd((d, dff)), rnd((d,))
        ff1_t.append(W1.T); ff1b.append(b1[None, :])
        ff2_t.append(W2.T); ff2b.append(b2[None, :])

    p["wqkv_t"] = jnp.stack(wqkv_t); p["bqkv"] = jnp.stack(bqkv)
    p["wo_t"] = jnp.stack(wo_t); p["bo"] = jnp.stack(bo)
    p["ln1w"] = jnp.stack(ln1w); p["ln1b"] = jnp.stack(ln1b)
    p["ln2w"] = jnp.stack(ln2w); p["ln2b"] = jnp.stack(ln2b)
    p["ff1_t"] = jnp.stack(ff1_t); p["ff1b"] = jnp.stack(ff1b)
    p["ff2_t"] = jnp.stack(ff2_t); p["ff2b"] = jnp.stack(ff2b)

    # classifier: Linear(max_sequence, n_out) — stored transposed (S, n_out)
    p["cls_w_t"] = rnd((max_sequence, n_out))
    p["cls_b"] = rnd((1, n_out))
    return p


# ----------------------------------------------------------------------------
# Full forward (matches TopologicalDirectionalTransformer.forward semantics)
# ----------------------------------------------------------------------------
def topological_directional_transformer(xs, params, *, max_sequence, n_hidden,
                                        n_out, nhead, num_layers):
    feats = directional_diagram_features(xs, params["dir_filters"], max_sequence)
    return transformer_pallas(feats, params, num_layers=num_layers, nhead=nhead,
                              n_hidden=n_hidden, n_out=n_out)             # (B, n_out)


if __name__ == "__main__":
    # small shapes consistent with the module
    B, H, W = 2, 16, 16
    filter_count = 4
    max_sequence = 64
    n_diag = 4                    # diagram columns: (birth, death, hom_dim, alpha)
    n_hidden = 16
    n_out = 4
    nhead = 2
    num_layers = 2
    dim_feedforward = 16

    key = jax.random.PRNGKey(0)
    kx, kp = jax.random.split(key)
    xs = jax.random.uniform(kx, (B, H, W), jnp.float32, 0.0, 255.0)

    params = init_params(kp, filter_count, n_diag, n_hidden, n_out,
                         max_sequence, nhead, num_layers, dim_feedforward)

    out = topological_directional_transformer(
        xs, params, max_sequence=max_sequence, n_hidden=n_hidden,
        n_out=n_out, nhead=nhead, num_layers=num_layers)
    out = jax.block_until_ready(out)

    assert out.shape == (B, n_out), out.shape
    assert bool(jnp.all(jnp.isfinite(out)))
    print("KERNEL_OK")
</pallas_src>

<mosaic_0001>
module attributes {stable_mosaic.version = 11 : i64} {
  func.func @kernel(%arg0: i32, %arg1: i32, %arg2: memref<64x4xf32, #tpu.memory_space<vmem>>, %arg3: memref<4x16xbf16, #tpu.memory_space<vmem>>, %arg4: memref<1x16xf32, #tpu.memory_space<vmem>>, %arg5: memref<1x2x16x8xbf16, #tpu.memory_space<vmem>>, %arg6: memref<1x2x16x8xbf16, #tpu.memory_space<vmem>>, %arg7: memref<1x2x16x8xbf16, #tpu.memory_space<vmem>>, %arg8: memref<1x2x1x8xf32, #tpu.memory_space<vmem>>, %arg9: memref<1x2x1x8xf32, #tpu.memory_space<vmem>>, %arg10: memref<1x2x1x8xf32, #tpu.memory_space<vmem>>, %arg11: memref<1x2x8x16xbf16, #tpu.memory_space<vmem>>, %arg12: memref<1x1x16xf32, #tpu.memory_space<vmem>>, %arg13: memref<1x1x16xf32, #tpu.memory_space<vmem>>, %arg14: memref<1x1x16xf32, #tpu.memory_space<vmem>>, %arg15: memref<1x1x16xf32, #tpu.memory_space<vmem>>, %arg16: memref<1x1x16xf32, #tpu.memory_space<vmem>>, %arg17: memref<1x16x16xbf16, #tpu.memory_space<vmem>>, %arg18: memref<1x1x16xf32, #tpu.memory_space<vmem>>, %arg19: memref<1x16x16xbf16, #tpu.memory_space<vmem>>, %arg20: memref<1x1x16xf32, #tpu.memory_space<vmem>>, %arg21: memref<64x4xbf16, #tpu.memory_space<vmem>>, %arg22: memref<1x4xf32, #tpu.memory_space<vmem>>, %arg23: memref<1x1x4xf32, #tpu.memory_space<vmem>>, %arg24: memref<64x16xf32, #tpu.memory_space<vmem>>) attributes {dimension_semantics = [#tpu.dimension_semantics<parallel>, #tpu.dimension_semantics<arbitrary>], iteration_bounds = array<i64: 2, 2>, scalar_prefetch = 0 : i64, scratch_operands = 1 : i64, tpu.core_type = #tpu.core_type<tc>, window_params = [{transform_indices = @transform_0, window_bounds = array<i64: 64, 4>}, {pipeline_mode = #tpu.pipeline_mode<synchronous>, transform_indices = @transform_1, window_bounds = array<i64: 4, 16>}, {pipeline_mode = #tpu.pipeline_mode<synchronous>, transform_indices = @transform_2, window_bounds = array<i64: 1, 16>}, {transform_indices = @transform_3, window_bounds = array<i64: 1, 2, 16, 8>}, {transform_indices = @transform_4, window_bounds = array<i64: 1, 2, 16, 8>}, {transform_indices = @transform_5, window_bounds = array<i64: 1, 2, 16, 8>}, {transform_indices = @transform_6, window_bounds = array<i64: 1, 2, 1, 8>}, {transform_indices = @transform_7, window_bounds = array<i64: 1, 2, 1, 8>}, {transform_indices = @transform_8, window_bounds = array<i64: 1, 2, 1, 8>}, {transform_indices = @transform_9, window_bounds = array<i64: 1, 2, 8, 16>}, {transform_indices = @transform_10, window_bounds = array<i64: 1, 1, 16>}, {transform_indices = @transform_11, window_bounds = array<i64: 1, 1, 16>}, {transform_indices = @transform_12, window_bounds = array<i64: 1, 1, 16>}, {transform_indices = @transform_13, window_bounds = array<i64: 1, 1, 16>}, {transform_indices = @transform_14, window_bounds = array<i64: 1, 1, 16>}, {transform_indices = @transform_15, window_bounds = array<i64: 1, 16, 16>}, {transform_indices = @transform_16, window_bounds = array<i64: 1, 1, 16>}, {transform_indices = @transform_17, window_bounds = array<i64: 1, 16, 16>}, {transform_indices = @transform_18, window_bounds = array<i64: 1, 1, 16>}, {pipeline_mode = #tpu.pipeline_mode<synchronous>, transform_indices = @transform_19, window_bounds = array<i64: 64, 4>}, {pipeline_mode = #tpu.pipeline_mode<synchronous>, transform_indices = @transform_20, window_bounds = array<i64: 1, 4>}, {transform_indices = @transform_21, window_bounds = array<i64: 1, 1, 4>}]} {
    %c0_i32 = arith.constant 0 : i32
    %0 = arith.cmpi eq, %arg1, %c0_i32 : i32
    %1 = arith.extui %0 : i1 to i32
    %c0_i32_0 = arith.constant 0 : i32
    %2 = arith.cmpi ne, %1, %c0_i32_0 : i32
    scf.if %2 {
      %c0_116 = arith.constant 0 : index
      %c0_117 = arith.constant 0 : index
      %178 = vector.load %arg2[%c0_116, %c0_117] : memref<64x4xf32, #tpu.memory_space<vmem>>, vector<64x4xf32>
      %179 = arith.truncf %178 : vector<64x4xf32> to vector<64x4xbf16>
      %c0_118 = arith.constant 0 : index
      %c0_119 = arith.constant 0 : index
      %180 = vector.load %arg3[%c0_118, %c0_119] : memref<4x16xbf16, #tpu.memory_space<vmem>>, vector<4x16xbf16>
      %cst_120 = arith.constant dense<0.000000e+00> : vector<64x16xf32>
      %181 = tpu.matmul %179, %180, %cst_120 {dimension_numbers = #tpu.dot_dimension_numbers<[1], [0], [0], [1], [0, 0, 1, 1], [], []>} : vector<64x4xbf16>, vector<4x16xbf16>, vector<64x16xf32> -> vector<64x16xf32>
      %c0_121 = arith.constant 0 : index
      %c0_122 = arith.constant 0 : index
      %182 = vector.load %arg4[%c0_121, %c0_122] : memref<1x16xf32, #tpu.memory_space<vmem>>, vector<1x16xf32>
      %183 = vector.broadcast %182 : vector<1x16xf32> to vector<64x16xf32>
      %184 = arith.addf %181, %183 : vector<64x16xf32>
      %c0_123 = arith.constant 0 : index
      %c0_124 = arith.constant 0 : index
      %185 = vector.load %arg24[%c0_123, %c0_124] : memref<64x16xf32, #tpu.memory_space<vmem>>, vector<64x16xf32>
      tpu.vector_store %arg24[%c0_123, %c0_124], %184 {strides = array<i32>} : memref<64x16xf32, #tpu.memory_space<vmem>>, vector<64x16xf32>,
    } else {
    }
    %c0 = arith.constant 0 : index
    %c0_1 = arith.constant 0 : index
    %3 = vector.load %arg24[%c0, %c0_1] : memref<64x16xf32, #tpu.memory_space<vmem>>, vector<64x16xf32>
    %4 = arith.truncf %3 : vector<64x16xf32> to vector<64x16xbf16>
    %cst = arith.constant 0.000000e+00 : f32
    %5 = vector.broadcast %cst : f32 to vector<64x16xf32>
    %c0_2 = arith.constant 0 : index
    %c0_3 = arith.constant 0 : index
    %c0_4 = arith.constant 0 : index
    %c0_5 = arith.constant 0 : index
    %6 = vector.load %arg5[%c0_2, %c0_3, %c0_4, %c0_5] : memref<1x2x16x8xbf16, #tpu.memory_space<vmem>>, vector<1x1x16x8xbf16>
    %7 = vector.shape_cast %6 : vector<1x1x16x8xbf16> to vector<16x8xbf16>
    %cst_6 = arith.constant dense<0.000000e+00> : vector<64x8xf32>
    %8 = tpu.matmul %4, %7, %cst_6 {dimension_numbers = #tpu.dot_dimension_numbers<[1], [0], [0], [1], [0, 0, 1, 1], [], []>} : vector<64x16xbf16>, vector<16x8xbf16>, vector<64x8xf32> -> vector<64x8xf32>
    %c0_7 = arith.constant 0 : index
    %c0_8 = arith.constant 0 : index
    %c0_9 = arith.constant 0 : index
    %c0_10 = arith.constant 0 : index
    %9 = vector.load %arg8[%c0_7, %c0_8, %c0_9, %c0_10] : memref<1x2x1x8xf32, #tpu.memory_space<vmem>>, vector<1x1x1x8xf32>
    %10 = vector.shape_cast %9 : vector<1x1x1x8xf32> to vector<1x8xf32>
    %11 = vector.broadcast %10 : vector<1x8xf32> to vector<64x8xf32>
    %12 = arith.addf %8, %11 : vector<64x8xf32>
    %13 = arith.truncf %12 : vector<64x8xf32> to vector<64x8xbf16>
    %c0_11 = arith.constant 0 : index
    %c0_12 = arith.constant 0 : index
    %c0_13 = arith.constant 0 : index
    %c0_14 = arith.constant 0 : index
    %14 = vector.load %arg6[%c0_11, %c0_12, %c0_13, %c0_14] : memref<1x2x16x8xbf16, #tpu.memory_space<vmem>>, vector<1x1x16x8xbf16>
    %15 = vector.shape_cast %14 : vector<1x1x16x8xbf16> to vector<16x8xbf16>
    %cst_15 = arith.constant dense<0.000000e+00> : vector<64x8xf32>
    %16 = tpu.matmul %4, %15, %cst_15 {dimension_numbers = #tpu.dot_dimension_numbers<[1], [0], [0], [1], [0, 0, 1, 1], [], []>} : vector<64x16xbf16>, vector<16x8xbf16>, vector<64x8xf32> -> vector<64x8xf32>
    %c0_16 = arith.constant 0 : index
    %c0_17 = arith.constant 0 : index
    %c0_18 = arith.constant 0 : index
    %c0_19 = arith.constant 0 : index
    %17 = vector.load %arg9[%c0_16, %c0_17, %c0_18, %c0_19] : memref<1x2x1x8xf32, #tpu.memory_space<vmem>>, vector<1x1x1x8xf32>
    %18 = vector.shape_cast %17 : vector<1x1x1x8xf32> to vector<1x8xf32>
    %19 = vector.broadcast %18 : vector<1x8xf32> to vector<64x8xf32>
    %20 = arith.addf %16, %19 : vector<64x8xf32>
    %21 = arith.truncf %20 : vector<64x8xf32> to vector<64x8xbf16>
    %c0_20 = arith.constant 0 : index
    %c0_21 = arith.constant 0 : index
    %c0_22 = arith.constant 0 : index
    %c0_23 = arith.constant 0 : index
    %22 = vector.load %arg7[%c0_20, %c0_21, %c0_22, %c0_23] : memref<1x2x16x8xbf16, #tpu.memory_space<vmem>>, vector<1x1x16x8xbf16>
    %23 = vector.shape_cast %22 : vector<1x1x16x8xbf16> to vector<16x8xbf16>
    %cst_24 = arith.constant dense<0.000000e+00> : vector<64x8xf32>
    %24 = tpu.matmul %4, %23, %cst_24 {dimension_numbers = #tpu.dot_dimension_numbers<[1], [0], [0], [1], [0, 0, 1, 1], [], []>} : vector<64x16xbf16>, vector<16x8xbf16>, vector<64x8xf32> -> vector<64x8xf32>
    %c0_25 = arith.constant 0 : index
    %c0_26 = arith.constant 0 : index
    %c0_27 = arith.constant 0 : index
    %c0_28 = arith.constant 0 : index
    %25 = vector.load %arg10[%c0_25, %c0_26, %c0_27, %c0_28] : memref<1x2x1x8xf32, #tpu.memory_space<vmem>>, vector<1x1x1x8xf32>
    %26 = vector.shape_cast %25 : vector<1x1x1x8xf32> to vector<1x8xf32>
    %27 = vector.broadcast %26 : vector<1x8xf32> to vector<64x8xf32>
    %28 = arith.addf %24, %27 : vector<64x8xf32>
    %29 = arith.truncf %28 : vector<64x8xf32> to vector<64x8xbf16>
    %30 = vector.shape_cast %13 : vector<64x8xbf16> to vector<1x64x8xbf16>
    %31 = vector.shape_cast %21 : vector<64x8xbf16> to vector<1x64x8xbf16>
    %32 = vector.shape_cast %29 : vector<64x8xbf16> to vector<1x64x8xbf16>
    "tpu.trace_start"() <{level = 10 : i32, message = "bqc,bkc->bqk"}> : () -> ()
    %cst_29 = arith.constant dense<0.000000e+00> : vector<1x64x64xf32>
    %33 = tpu.matmul %30, %31, %cst_29 {dimension_numbers = #tpu.dot_dimension_numbers<[2], [2], [1], [1], [0, 0, 0, 1, 1, 1], [0], [0]>} : vector<1x64x8xbf16>, vector<1x64x8xbf16>, vector<1x64x64xf32> -> vector<1x64x64xf32>
    "tpu.trace_stop"() : () -> ()
    %cst_30 = arith.constant dense<0xFF800000> : vector<1x64xf32>
    %34 = vector.multi_reduction <maximumf>, %33, %cst_30 [2] : vector<1x64x64xf32> to vector<1x64xf32>
    %35 = vector.shape_cast %34 : vector<1x64xf32> to vector<1x64x1xf32>
    %36 = vector.broadcast %35 : vector<1x64x1xf32> to vector<1x64x64xf32>
    %37 = arith.subf %33, %36 : vector<1x64x64xf32>
    %38 = math.exp %37 : vector<1x64x64xf32>
    %cst_31 = arith.constant dense<0.000000e+00> : vector<1x64xf32>
    %39 = vector.multi_reduction <add>, %38, %cst_31 [2] : vector<1x64x64xf32> to vector<1x64xf32>
    %40 = vector.shape_cast %39 : vector<1x64xf32> to vector<1x64x1xf32>
    %41 = tpu.reciprocal %40 {approx = true} : vector<1x64x1xf32> -> vector<1x64x1xf32>
    %42 = vector.broadcast %41 : vector<1x64x1xf32> to vector<1x64x64xf32>
    %43 = arith.mulf %38, %42 : vector<1x64x64xf32>
    %44 = arith.truncf %43 : vector<1x64x64xf32> to vector<1x64x64xbf16>
    "tpu.trace_start"() <{level = 10 : i32, message = "bqk,bkc->bqc"}> : () -> ()
    %cst_32 = arith.constant dense<0.000000e+00> : vector<1x64x8xf32>
    %45 = tpu.matmul %44, %32, %cst_32 {dimension_numbers = #tpu.dot_dimension_numbers<[2], [1], [1], [2], [0, 0, 0, 1, 1, 2], [0], [0]>} : vector<1x64x64xbf16>, vector<1x64x8xbf16>, vector<1x64x8xf32> -> vector<1x64x8xf32>
    "tpu.trace_stop"() : () -> ()
    %46 = vector.shape_cast %45 : vector<1x64x8xf32> to vector<64x8xf32>
    %47 = arith.truncf %46 : vector<64x8xf32> to vector<64x8xbf16>
    %c0_33 = arith.constant 0 : index
    %c0_34 = arith.constant 0 : index
    %c0_35 = arith.constant 0 : index
    %c0_36 = arith.constant 0 : index
    %48 = vector.load %arg11[%c0_33, %c0_34, %c0_35, %c0_36] : memref<1x2x8x16xbf16, #tpu.memory_space<vmem>>, vector<1x1x8x16xbf16>
    %49 = vector.shape_cast %48 : vector<1x1x8x16xbf16> to vector<8x16xbf16>
    %cst_37 = arith.constant dense<0.000000e+00> : vector<64x16xf32>
    %50 = tpu.matmul %47, %49, %cst_37 {dimension_numbers = #tpu.dot_dimension_numbers<[1], [0], [0], [1], [0, 0, 1, 1], [], []>} : vector<64x8xbf16>, vector<8x16xbf16>, vector<64x16xf32> -> vector<64x16xf32>
    %51 = arith.addf %5, %50 : vector<64x16xf32>
    %c0_38 = arith.constant 0 : index
    %c1 = arith.constant 1 : index
    %c0_39 = arith.constant 0 : index
    %c0_40 = arith.constant 0 : index
    %52 = vector.load %arg5[%c0_38, %c1, %c0_39, %c0_40] : memref<1x2x16x8xbf16, #tpu.memory_space<vmem>>, vector<1x1x16x8xbf16>
    %53 = vector.shape_cast %52 : vector<1x1x16x8xbf16> to vector<16x8xbf16>
    %cst_41 = arith.constant dense<0.000000e+00> : vector<64x8xf32>
    %54 = tpu.matmul %4, %53, %cst_41 {dimension_numbers = #tpu.dot_dimension_numbers<[1], [0], [0], [1], [0, 0, 1, 1], [], []>} : vector<64x16xbf16>, vector<16x8xbf16>, vector<64x8xf32> -> vector<64x8xf32>
    %c0_42 = arith.constant 0 : index
    %c1_43 = arith.constant 1 : index
    %c0_44 = arith.constant 0 : index
    %c0_45 = arith.constant 0 : index
    %55 = vector.load %arg8[%c0_42, %c1_43, %c0_44, %c0_45] : memref<1x2x1x8xf32, #tpu.memory_space<vmem>>, vector<1x1x1x8xf32>
    %56 = vector.shape_cast %55 : vector<1x1x1x8xf32> to vector<1x8xf32>
    %57 = vector.broadcast %56 : vector<1x8xf32> to vector<64x8xf32>
    %58 = arith.addf %54, %57 : vector<64x8xf32>
    %59 = arith.truncf %58 : vector<64x8xf32> to vector<64x8xbf16>
    %c0_46 = arith.constant 0 : index
    %c1_47 = arith.constant 1 : index
    %c0_48 = arith.constant 0 : index
    %c0_49 = arith.constant 0 : index
    %60 = vector.load %arg6[%c0_46, %c1_47, %c0_48, %c0_49] : memref<1x2x16x8xbf16, #tpu.memory_space<vmem>>, vector<1x1x16x8xbf16>
    %61 = vector.shape_cast %60 : vector<1x1x16x8xbf16> to vector<16x8xbf16>
    %cst_50 = arith.constant dense<0.000000e+00> : vector<64x8xf32>
    %62 = tpu.matmul %4, %61, %cst_50 {dimension_numbers = #tpu.dot_dimension_numbers<[1], [0], [0], [1], [0, 0, 1, 1], [], []>} : vector<64x16xbf16>, vector<16x8xbf16>, vector<64x8xf32> -> vector<64x8xf32>
    %c0_51 = arith.constant 0 : index
    %c1_52 = arith.constant 1 : index
    %c0_53 = arith.constant 0 : index
    %c0_54 = arith.constant 0 : index
    %63 = vector.load %arg9[%c0_51, %c1_52, %c0_53, %c0_54] : memref<1x2x1x8xf32, #tpu.memory_space<vmem>>, vector<1x1x1x8xf32>
    %64 = vector.shape_cast %63 : vector<1x1x1x8xf32> to vector<1x8xf32>
    %65 = vector.broadcast %64 : vector<1x8xf32> to vector<64x8xf32>
    %66 = arith.addf %62, %65 : vector<64x8xf32>
    %67 = arith.truncf %66 : vector<64x8xf32> to vector<64x8xbf16>
    %c0_55 = arith.constant 0 : index
    %c1_56 = arith.constant 1 : index
    %c0_57 = arith.constant 0 : index
    %c0_58 = arith.constant 0 : index
    %68 = vector.load %arg7[%c0_55, %c1_56, %c0_57, %c0_58] : memref<1x2x16x8xbf16, #tpu.memory_space<vmem>>, vector<1x1x16x8xbf16>
    %69 = vector.shape_cast %68 : vector<1x1x16x8xbf16> to vector<16x8xbf16>
    %cst_59 = arith.constant dense<0.000000e+00> : vector<64x8xf32>
    %70 = tpu.matmul %4, %69, %cst_59 {dimension_numbers = #tpu.dot_dimension_numbers<[1], [0], [0], [1], [0, 0, 1, 1], [], []>} : vector<64x16xbf16>, vector<16x8xbf16>, vector<64x8xf32> -> vector<64x8xf32>
    %c0_60 = arith.constant 0 : index
    %c1_61 = arith.constant 1 : index
    %c0_62 = arith.constant 0 : index
    %c0_63 = arith.constant 0 : index
    %71 = vector.load %arg10[%c0_60, %c1_61, %c0_62, %c0_63] : memref<1x2x1x8xf32, #tpu.memory_space<vmem>>, vector<1x1x1x8xf32>
    %72 = vector.shape_cast %71 : vector<1x1x1x8xf32> to vector<1x8xf32>
    %73 = vector.broadcast %72 : vector<1x8xf32> to vector<64x8xf32>
    %74 = arith.addf %70, %73 : vector<64x8xf32>
    %75 = arith.truncf %74 : vector<64x8xf32> to vector<64x8xbf16>
    %76 = vector.shape_cast %59 : vector<64x8xbf16> to vector<1x64x8xbf16>
    %77 = vector.shape_cast %67 : vector<64x8xbf16> to vector<1x64x8xbf16>
    %78 = vector.shape_cast %75 : vector<64x8xbf16> to vector<1x64x8xbf16>
    "tpu.trace_start"() <{level = 10 : i32, message = "bqc,bkc->bqk"}> : () -> ()
    %cst_64 = arith.constant dense<0.000000e+00> : vector<1x64x64xf32>
    %79 = tpu.matmul %76, %77, %cst_64 {dimension_numbers = #tpu.dot_dimension_numbers<[2], [2], [1], [1], [0, 0, 0, 1, 1, 1], [0], [0]>} : vector<1x64x8xbf16>, vector<1x64x8xbf16>, vector<1x64x64xf32> -> vector<1x64x64xf32>
    "tpu.trace_stop"() : () -> ()
    %cst_65 = arith.constant dense<0xFF800000> : vector<1x64xf32>
    %80 = vector.multi_reduction <maximumf>, %79, %cst_65 [2] : vector<1x64x64xf32> to vector<1x64xf32>
    %81 = vector.shape_cast %80 : vector<1x64xf32> to vector<1x64x1xf32>
    %82 = vector.broadcast %81 : vector<1x64x1xf32> to vector<1x64x64xf32>
    %83 = arith.subf %79, %82 : vector<1x64x64xf32>
    %84 = math.exp %83 : vector<1x64x64xf32>
    %cst_66 = arith.constant dense<0.000000e+00> : vector<1x64xf32>
    %85 = vector.multi_reduction <add>, %84, %cst_66 [2] : vector<1x64x64xf32> to vector<1x64xf32>
    %86 = vector.shape_cast %85 : vector<1x64xf32> to vector<1x64x1xf32>
    %87 = tpu.reciprocal %86 {approx = true} : vector<1x64x1xf32> -> vector<1x64x1xf32>
    %88 = vector.broadcast %87 : vector<1x64x1xf32> to vector<1x64x64xf32>
    %89 = arith.mulf %84, %88 : vector<1x64x64xf32>
    %90 = arith.truncf %89 : vector<1x64x64xf32> to vector<1x64x64xbf16>
    "tpu.trace_start"() <{level = 10 : i32, message = "bqk,bkc->bqc"}> : () -> ()
    %cst_67 = arith.constant dense<0.000000e+00> : vector<1x64x8xf32>
    %91 = tpu.matmul %90, %78, %cst_67 {dimension_numbers = #tpu.dot_dimension_numbers<[2], [1], [1], [2], [0, 0, 0, 1, 1, 2], [0], [0]>} : vector<1x64x64xbf16>, vector<1x64x8xbf16>, vector<1x64x8xf32> -> vector<1x64x8xf32>
    "tpu.trace_stop"() : () -> ()
    %92 = vector.shape_cast %91 : vector<1x64x8xf32> to vector<64x8xf32>
    %93 = arith.truncf %92 : vector<64x8xf32> to vector<64x8xbf16>
    %c0_68 = arith.constant 0 : index
    %c1_69 = arith.constant 1 : index
    %c0_70 = arith.constant 0 : index
    %c0_71 = arith.constant 0 : index
    %94 = vector.load %arg11[%c0_68, %c1_69, %c0_70, %c0_71] : memref<1x2x8x16xbf16, #tpu.memory_space<vmem>>, vector<1x1x8x16xbf16>
    %95 = vector.shape_cast %94 : vector<1x1x8x16xbf16> to vector<8x16xbf16>
    %cst_72 = arith.constant dense<0.000000e+00> : vector<64x16xf32>
    %96 = tpu.matmul %93, %95, %cst_72 {dimension_numbers = #tpu.dot_dimension_numbers<[1], [0], [0], [1], [0, 0, 1, 1], [], []>} : vector<64x8xbf16>, vector<8x16xbf16>, vector<64x16xf32> -> vector<64x16xf32>
    %97 = arith.addf %51, %96 : vector<64x16xf32>
    %c0_73 = arith.constant 0 : index
    %c0_74 = arith.constant 0 : index
    %c0_75 = arith.constant 0 : index
    %98 = vector.load %arg12[%c0_73, %c0_74, %c0_75] : memref<1x1x16xf32, #tpu.memory_space<vmem>>, vector<1x1x16xf32>
    %99 = vector.shape_cast %98 : vector<1x1x16xf32> to vector<1x16xf32>
    %100 = vector.broadcast %99 : vector<1x16xf32> to vector<64x16xf32>
    %101 = arith.addf %97, %100 : vector<64x16xf32>
    %102 = arith.addf %3, %101 : vector<64x16xf32>
    %c0_76 = arith.constant 0 : index
    %c0_77 = arith.constant 0 : index
    %c0_78 = arith.constant 0 : index
    %103 = vector.load %arg13[%c0_76, %c0_77, %c0_78] : memref<1x1x16xf32, #tpu.memory_space<vmem>>, vector<1x1x16xf32>
    %104 = vector.shape_cast %103 : vector<1x1x16xf32> to vector<1x16xf32>
    %c0_79 = arith.constant 0 : index
    %c0_80 = arith.constant 0 : index
    %c0_81 = arith.constant 0 : index
    %105 = vector.load %arg14[%c0_79, %c0_80, %c0_81] : memref<1x1x16xf32, #tpu.memory_space<vmem>>, vector<1x1x16xf32>
    %106 = vector.shape_cast %105 : vector<1x1x16xf32> to vector<1x16xf32>
    %cst_82 = arith.constant dense<0.000000e+00> : vector<64xf32>
    %107 = vector.multi_reduction <add>, %102, %cst_82 [1] : vector<64x16xf32> to vector<64xf32>
    %108 = vector.shape_cast %107 : vector<64xf32> to vector<64x1xf32>
    %cst_83 = arith.constant 1.600000e+01 : f32
    %109 = vector.broadcast %cst_83 : f32 to vector<64x1xf32>
    %110 = arith.divf %108, %109 : vector<64x1xf32>
    %111 = vector.broadcast %110 : vector<64x1xf32> to vector<64x16xf32>
    %112 = arith.subf %102, %111 : vector<64x16xf32>
    %113 = arith.mulf %112, %112 : vector<64x16xf32>
    %cst_84 = arith.constant dense<0.000000e+00> : vector<64xf32>
    %114 = vector.multi_reduction <add>, %113, %cst_84 [1] : vector<64x16xf32> to vector<64xf32>
    %115 = vector.shape_cast %114 : vector<64xf32> to vector<64x1xf32>
    %cst_85 = arith.constant 1.600000e+01 : f32
    %116 = vector.broadcast %cst_85 : f32 to vector<64x1xf32>
    %117 = arith.divf %115, %116 : vector<64x1xf32>
    %118 = vector.broadcast %110 : vector<64x1xf32> to vector<64x16xf32>
    %119 = arith.subf %102, %118 : vector<64x16xf32>
    %cst_86 = arith.constant 9.99999974E-6 : f32
    %120 = vector.broadcast %cst_86 : f32 to vector<64x1xf32>
    %121 = arith.addf %117, %120 : vector<64x1xf32>
    %122 = math.rsqrt %121 : vector<64x1xf32>
    %123 = vector.broadcast %122 : vector<64x1xf32> to vector<64x16xf32>
    %124 = arith.mulf %119, %123 : vector<64x16xf32>
    %125 = vector.broadcast %104 : vector<1x16xf32> to vector<64x16xf32>
    %126 = arith.mulf %124, %125 : vector<64x16xf32>
    %127 = vector.broadcast %106 : vector<1x16xf32> to vector<64x16xf32>
    %128 = arith.addf %126, %127 : vector<64x16xf32>
    %129 = arith.truncf %128 : vector<64x16xf32> to vector<64x16xbf16>
    %c0_87 = arith.constant 0 : index
    %c0_88 = arith.constant 0 : index
    %c0_89 = arith.constant 0 : index
    %130 = vector.load %arg17[%c0_87, %c0_88, %c0_89] : memref<1x16x16xbf16, #tpu.memory_space<vmem>>, vector<1x16x16xbf16>
    %131 = vector.shape_cast %130 : vector<1x16x16xbf16> to vector<16x16xbf16>
    %cst_90 = arith.constant dense<0.000000e+00> : vector<64x16xf32>
    %132 = tpu.matmul %129, %131, %cst_90 {dimension_numbers = #tpu.dot_dimension_numbers<[1], [0], [0], [1], [0, 0, 1, 1], [], []>} : vector<64x16xbf16>, vector<16x16xbf16>, vector<64x16xf32> -> vector<64x16xf32>
    %c0_91 = arith.constant 0 : index
    %c0_92 = arith.constant 0 : index
    %c0_93 = arith.constant 0 : index
    %133 = vector.load %arg18[%c0_91, %c0_92, %c0_93] : memref<1x1x16xf32, #tpu.memory_space<vmem>>, vector<1x1x16xf32>
    %134 = vector.shape_cast %133 : vector<1x1x16xf32> to vector<1x16xf32>
    %135 = vector.broadcast %134 : vector<1x16xf32> to vector<64x16xf32>
    %136 = arith.addf %132, %135 : vector<64x16xf32>
    %cst_94 = arith.constant 0.000000e+00 : f32
    %137 = vector.broadcast %cst_94 : f32 to vector<64x16xf32>
    %138 = arith.maximumf %136, %137 : vector<64x16xf32>
    %139 = arith.truncf %138 : vector<64x16xf32> to vector<64x16xbf16>
    %c0_95 = arith.constant 0 : index
    %c0_96 = arith.constant 0 : index
    %c0_97 = arith.constant 0 : index
    %140 = vector.load %arg19[%c0_95, %c0_96, %c0_97] : memref<1x16x16xbf16, #tpu.memory_space<vmem>>, vector<1x16x16xbf16>
    %141 = vector.shape_cast %140 : vector<1x16x16xbf16> to vector<16x16xbf16>
    %cst_98 = arith.constant dense<0.000000e+00> : vector<64x16xf32>
    %142 = tpu.matmul %139, %141, %cst_98 {dimension_numbers = #tpu.dot_dimension_numbers<[1], [0], [0], [1], [0, 0, 1, 1], [], []>} : vector<64x16xbf16>, vector<16x16xbf16>, vector<64x16xf32> -> vector<64x16xf32>
    %c0_99 = arith.constant 0 : index
    %c0_100 = arith.constant 0 : index
    %c0_101 = arith.constant 0 : index
    %143 = vector.load %arg20[%c0_99, %c0_100, %c0_101] : memref<1x1x16xf32, #tpu.memory_space<vmem>>, vector<1x1x16xf32>
    %144 = vector.shape_cast %143 : vector<1x1x16xf32> to vector<1x16xf32>
    %145 = vector.broadcast %144 : vector<1x16xf32> to vector<64x16xf32>
    %146 = arith.addf %142, %145 : vector<64x16xf32>
    %147 = arith.addf %128, %146 : vector<64x16xf32>
    %c0_102 = arith.constant 0 : index
    %c0_103 = arith.constant 0 : index
    %c0_104 = arith.constant 0 : index
    %148 = vector.load %arg15[%c0_102, %c0_103, %c0_104] : memref<1x1x16xf32, #tpu.memory_space<vmem>>, vector<1x1x16xf32>
    %149 = vector.shape_cast %148 : vector<1x1x16xf32> to vector<1x16xf32>
    %c0_105 = arith.constant 0 : index
    %c0_106 = arith.constant 0 : index
    %c0_107 = arith.constant 0 : index
    %150 = vector.load %arg16[%c0_105, %c0_106, %c0_107] : memref<1x1x16xf32, #tpu.memory_space<vmem>>, vector<1x1x16xf32>
    %151 = vector.shape_cast %150 : vector<1x1x16xf32> to vector<1x16xf32>
    %cst_108 = arith.constant dense<0.000000e+00> : vector<64xf32>
    %152 = vector.multi_reduction <add>, %147, %cst_108 [1] : vector<64x16xf32> to vector<64xf32>
    %153 = vector.shape_cast %152 : vector<64xf32> to vector<64x1xf32>
    %cst_109 = arith.constant 1.600000e+01 : f32
    %154 = vector.broadcast %cst_109 : f32 to vector<64x1xf32>
    %155 = arith.divf %153, %154 : vector<64x1xf32>
    %156 = vector.broadcast %155 : vector<64x1xf32> to vector<64x16xf32>
    %157 = arith.subf %147, %156 : vector<64x16xf32>
    %158 = arith.mulf %157, %157 : vector<64x16xf32>
    %cst_110 = arith.constant dense<0.000000e+00> : vector<64xf32>
    %159 = vector.multi_reduction <add>, %158, %cst_110 [1] : vector<64x16xf32> to vector<64xf32>
    %160 = vector.shape_cast %159 : vector<64xf32> to vector<64x1xf32>
    %cst_111 = arith.constant 1.600000e+01 : f32
    %161 = vector.broadcast %cst_111 : f32 to vector<64x1xf32>
    %162 = arith.divf %160, %161 : vector<64x1xf32>
    %163 = vector.broadcast %155 : vector<64x1xf32> to vector<64x16xf32>
    %164 = arith.subf %147, %163 : vector<64x16xf32>
    %cst_112 = arith.constant 9.99999974E-6 : f32
    %165 = vector.broadcast %cst_112 : f32 to vector<64x1xf32>
    %166 = arith.addf %162, %165 : vector<64x1xf32>
    %167 = math.rsqrt %166 : vector<64x1xf32>
    %168 = vector.broadcast %167 : vector<64x1xf32> to vector<64x16xf32>
    %169 = arith.mulf %164, %168 : vector<64x16xf32>
    %170 = vector.broadcast %149 : vector<1x16xf32> to vector<64x16xf32>
    %171 = arith.mulf %169, %170 : vector<64x16xf32>
    %172 = vector.broadcast %151 : vector<1x16xf32> to vector<64x16xf32>
    %173 = arith.addf %171, %172 : vector<64x16xf32>
    %c0_113 = arith.constant 0 : index
    %c0_114 = arith.constant 0 : index
    %174 = vector.load %arg24[%c0_113, %c0_114] : memref<64x16xf32, #tpu.memory_space<vmem>>, vector<64x16xf32>
    tpu.vector_store %arg24[%c0_113, %c0_114], %173 {strides = array<i32>} : memref<64x16xf32, #tpu.memory_space<vmem>>, vector<64x16xf32>,
    %c1_i32 = arith.constant 1 : i32
    %175 = arith.cmpi eq, %arg1, %c1_i32 : i32
    %176 = arith.extui %175 : i1 to i32
    %c0_i32_115 = arith.constant 0 : i32
    %177 = arith.cmpi ne, %176, %c0_i32_115 : i32
    scf.if %177 {
      %178 = vector.shape_cast %173 : vector<64x16xf32> to vector<1x64x16xf32>
      %cst_116 = arith.constant dense<0.000000e+00> : vector<1x64xf32>
      %179 = vector.multi_reduction <add>, %178, %cst_116 [2] : vector<1x64x16xf32> to vector<1x64xf32>
      %cst_117 = arith.constant 6.250000e-02 : f32
      %180 = vector.broadcast %cst_117 : f32 to vector<1x64xf32>
      %181 = arith.mulf %179, %180 : vector<1x64xf32>
      %182 = arith.truncf %181 : vector<1x64xf32> to vector<1x64xbf16>
      %c0_118 = arith.constant 0 : index
      %c0_119 = arith.constant 0 : index
      %183 = vector.load %arg21[%c0_118, %c0_119] : memref<64x4xbf16, #tpu.memory_space<vmem>>, vector<64x4xbf16>
      %cst_120 = arith.constant dense<0.000000e+00> : vector<1x4xf32>
      %184 = tpu.matmul %182, %183, %cst_120 {dimension_numbers = #tpu.dot_dimension_numbers<[1], [0], [0], [1], [0, 0, 1, 1], [], []>} : vector<1x64xbf16>, vector<64x4xbf16>, vector<1x4xf32> -> vector<1x4xf32>
      %c0_121 = arith.constant 0 : index
      %c0_122 = arith.constant 0 : index
      %185 = vector.load %arg22[%c0_121, %c0_122] : memref<1x4xf32, #tpu.memory_space<vmem>>, vector<1x4xf32>
      %186 = arith.addf %184, %185 : vector<1x4xf32>
      %cst_123 = arith.constant dense<0xFF800000> : vector<1xf32>
      %187 = vector.multi_reduction <maximumf>, %186, %cst_123 [1] : vector<1x4xf32> to vector<1xf32>
      %188 = vector.shape_cast %187 : vector<1xf32> to vector<1x1xf32>
      %189 = vector.broadcast %188 : vector<1x1xf32> to vector<1x4xf32>
      %190 = arith.subf %186, %189 : vector<1x4xf32>
      %191 = math.exp %190 : vector<1x4xf32>
      %cst_124 = arith.constant dense<0.000000e+00> : vector<1xf32>
      %192 = vector.multi_reduction <add>, %191, %cst_124 [1] : vector<1x4xf32> to vector<1xf32>
      %193 = vector.shape_cast %192 : vector<1xf32> to vector<1x1xf32>
      %194 = vector.broadcast %193 : vector<1x1xf32> to vector<1x4xf32>
      %195 = arith.divf %191, %194 : vector<1x4xf32>
      %c0_125 = arith.constant 0 : index
      %c0_126 = arith.constant 0 : index
      %c0_127 = arith.constant 0 : index
      %196 = vector.load %arg23[%c0_125, %c0_126, %c0_127] : memref<1x1x4xf32, #tpu.memory_space<vmem>>, vector<1x1x4xf32>
      %197 = vector.shape_cast %196 : vector<1x1x4xf32> to vector<1x4xf32>
      %198 = vector.shape_cast %195 : vector<1x4xf32> to vector<1x1x4xf32>
      tpu.vector_store %arg23[%c0_125, %c0_126, %c0_127], %198 {strides = array<i32>} : memref<1x1x4xf32, #tpu.memory_space<vmem>>, vector<1x1x4xf32>,
    } else {
    }
    return
  }
  func.func @transform_0(%arg0: i32, %arg1: i32) -> (i32, i32) {
    %c0_i32 = arith.constant 0 : i32
    %c0_i32_0 = arith.constant 0 : i32
    return %arg0, %c0_i32 : i32, i32
  }
  func.func @transform_1(%arg0: i32, %arg1: i32) -> (i32, i32) {
    %c0_i32 = arith.constant 0 : i32
    %c0_i32_0 = arith.constant 0 : i32
    %c0_i32_1 = arith.constant 0 : i32
    return %c0_i32, %c0_i32_0 : i32, i32
  }
  func.func @transform_2(%arg0: i32, %arg1: i32) -> (i32, i32) {
    %c0_i32 = arith.constant 0 : i32
    %c0_i32_0 = arith.constant 0 : i32
    %c0_i32_1 = arith.constant 0 : i32
    return %c0_i32, %c0_i32_0 : i32, i32
  }
  func.func @transform_3(%arg0: i32, %arg1: i32) -> (i32, i32, i32, i32) {
    %c0_i32 = arith.constant 0 : i32
    %c0_i32_0 = arith.constant 0 : i32
    %c0_i32_1 = arith.constant 0 : i32
    %c0_i32_2 = arith.constant 0 : i32
    return %arg1, %c0_i32, %c0_i32_0, %c0_i32_1 : i32, i32, i32, i32
  }
  func.func @transform_4(%arg0: i32, %arg1: i32) -> (i32, i32, i32, i32) {
    %c0_i32 = arith.constant 0 : i32
    %c0_i32_0 = arith.constant 0 : i32
    %c0_i32_1 = arith.constant 0 : i32
    %c0_i32_2 = arith.constant 0 : i32
    return %arg1, %c0_i32, %c0_i32_0, %c0_i32_1 : i32, i32, i32, i32
  }
  func.func @transform_5(%arg0: i32, %arg1: i32) -> (i32, i32, i32, i32) {
    %c0_i32 = arith.constant 0 : i32
    %c0_i32_0 = arith.constant 0 : i32
    %c0_i32_1 = arith.constant 0 : i32
    %c0_i32_2 = arith.constant 0 : i32
    return %arg1, %c0_i32, %c0_i32_0, %c0_i32_1 : i32, i32, i32, i32
  }
  func.func @transform_6(%arg0: i32, %arg1: i32) -> (i32, i32, i32, i32) {
    %c0_i32 = arith.constant 0 : i32
    %c0_i32_0 = arith.constant 0 : i32
    %c0_i32_1 = arith.constant 0 : i32
    %c0_i32_2 = arith.constant 0 : i32
    return %arg1, %c0_i32, %c0_i32_0, %c0_i32_1 : i32, i32, i32, i32
  }
  func.func @transform_7(%arg0: i32, %arg1: i32) -> (i32, i32, i32, i32) {
    %c0_i32 = arith.constant 0 : i32
    %c0_i32_0 = arith.constant 0 : i32
    %c0_i32_1 = arith.constant 0 : i32
    %c0_i32_2 = arith.constant 0 : i32
    return %arg1, %c0_i32, %c0_i32_0, %c0_i32_1 : i32, i32, i32, i32
  }
  func.func @transform_8(%arg0: i32, %arg1: i32) -> (i32, i32, i32, i32) {
    %c0_i32 = arith.constant 0 : i32
    %c0_i32_0 = arith.constant 0 : i32
    %c0_i32_1 = arith.constant 0 : i32
    %c0_i32_2 = arith.constant 0 : i32
    return %arg1, %c0_i32, %c0_i32_0, %c0_i32_1 : i32, i32, i32, i32
  }
  func.func @transform_9(%arg0: i32, %arg1: i32) -> (i32, i32, i32, i32) {
    %c0_i32 = arith.constant 0 : i32
    %c0_i32_0 = arith.constant 0 : i32
    %c0_i32_1 = arith.constant 0 : i32
    %c0_i32_2 = arith.constant 0 : i32
    return %arg1, %c0_i32, %c0_i32_0, %c0_i32_1 : i32, i32, i32, i32
  }
  func.func @transform_10(%arg0: i32, %arg1: i32) -> (i32, i32, i32) {
    %c0_i32 = arith.constant 0 : i32
    %c0_i32_0 = arith.constant 0 : i32
    %c0_i32_1 = arith.constant 0 : i32
    return %arg1, %c0_i32, %c0_i32_0 : i32, i32, i32
  }
  func.func @transform_11(%arg0: i32, %arg1: i32) -> (i32, i32, i32) {
    %c0_i32 = arith.constant 0 : i32
    %c0_i32_0 = arith.constant 0 : i32
    %c0_i32_1 = arith.constant 0 : i32
    return %arg1, %c0_i32, %c0_i32_0 : i32, i32, i32
  }
  func.func @transform_12(%arg0: i32, %arg1: i32) -> (i32, i32, i32) {
    %c0_i32 = arith.constant 0 : i32
    %c0_i32_0 = arith.constant 0 : i32
    %c0_i32_1 = arith.constant 0 : i32
    return %arg1, %c0_i32, %c0_i32_0 : i32, i32, i32
  }
  func.func @transform_13(%arg0: i32, %arg1: i32) -> (i32, i32, i32) {
    %c0_i32 = arith.constant 0 : i32
    %c0_i32_0 = arith.constant 0 : i32
    %c0_i32_1 = arith.constant 0 : i32
    return %arg1, %c0_i32, %c0_i32_0 : i32, i32, i32
  }
  func.func @transform_14(%arg0: i32, %arg1: i32) -> (i32, i32, i32) {
    %c0_i32 = arith.constant 0 : i32
    %c0_i32_0 = arith.constant 0 : i32
    %c0_i32_1 = arith.constant 0 : i32
    return %arg1, %c0_i32, %c0_i32_0 : i32, i32, i32
  }
  func.func @transform_15(%arg0: i32, %arg1: i32) -> (i32, i32, i32) {
    %c0_i32 = arith.constant 0 : i32
    %c0_i32_0 = arith.constant 0 : i32
    %c0_i32_1 = arith.constant 0 : i32
    return %arg1, %c0_i32, %c0_i32_0 : i32, i32, i32
  }
  func.func @transform_16(%arg0: i32, %arg1: i32) -> (i32, i32, i32) {
    %c0_i32 = arith.constant 0 : i32
    %c0_i32_0 = arith.constant 0 : i32
    %c0_i32_1 = arith.constant 0 : i32
    return %arg1, %c0_i32, %c0_i32_0 : i32, i32, i32
  }
  func.func @transform_17(%arg0: i32, %arg1: i32) -> (i32, i32, i32) {
    %c0_i32 = arith.constant 0 : i32
    %c0_i32_0 = arith.constant 0 : i32
    %c0_i32_1 = arith.constant 0 : i32
    return %arg1, %c0_i32, %c0_i32_0 : i32, i32, i32
  }
  func.func @transform_18(%arg0: i32, %arg1: i32) -> (i32, i32, i32) {
    %c0_i32 = arith.constant 0 : i32
    %c0_i32_0 = arith.constant 0 : i32
    %c0_i32_1 = arith.constant 0 : i32
    return %arg1, %c0_i32, %c0_i32_0 : i32, i32, i32
  }
  func.func @transform_19(%arg0: i32, %arg1: i32) -> (i32, i32) {
    %c0_i32 = arith.constant 0 : i32
    %c0_i32_0 = arith.constant 0 : i32
    %c0_i32_1 = arith.constant 0 : i32
    return %c0_i32, %c0_i32_0 : i32, i32
  }
  func.func @transform_20(%arg0: i32, %arg1: i32) -> (i32, i32) {
    %c0_i32 = arith.constant 0 : i32
    %c0_i32_0 = arith.constant 0 : i32
    %c0_i32_1 = arith.constant 0 : i32
    return %c0_i32, %c0_i32_0 : i32, i32
  }
  func.func @transform_21(%arg0: i32, %arg1: i32) -> (i32, i32, i32) {
    %c0_i32 = arith.constant 0 : i32
    %c0_i32_0 = arith.constant 0 : i32
    %c0_i32_1 = arith.constant 0 : i32
    return %arg0, %c0_i32, %c0_i32_0 : i32, i32, i32
  }
}

</mosaic_0001>

<bundles_post_ra>
// kernel: tpu_custom_call.1
= control target key start
LH: loop header
LB: loop body
LE: loop exit
PB: predicated region body
PF: predicated region fallthrough
CT: control target
= control target key end

     0   :  { %s4799_s0 = inlined_call_operand.vmem [shape: f32[128,4], index: 0, kind: input, shape index: {}]   ;;  %s4800_s1 = inlined_call_operand.vmem [shape: bf16[4,16], index: 1, kind: input, shape index: {}]   ;;  %s4801_s2 = inlined_call_operand.vmem [shape: f32[1,16], index: 2, kind: input, shape index: {}]   ;;  %s4802_s3 = inlined_call_operand.vmem [shape: bf16[2,2,16,8], index: 3, kind: input, shape index: {}]   ;;  %s4803_s4 = inlined_call_operand.vmem [shape: bf16[2,2,16,8], index: 4, kind: input, shape index: {}]   ;;  %s4804_s5 = inlined_call_operand.vmem [shape: bf16[2,2,16,8], index: 5, kind: input, shape index: {}]   ;;  %s4805_s6 = inlined_call_operand.vmem [shape: f32[2,2,1,8], index: 6, kind: input, shape index: {}]   ;;  %s4806_s7 = inlined_call_operand.vmem [shape: f32[2,2,1,8], index: 7, kind: input, shape index: {}]   ;;  %s4807_s8 = inlined_call_operand.vmem [shape: f32[2,2,1,8], index: 8, kind: input, shape index: {}]   ;;  %s4808_s9 = inlined_call_operand.vmem [shape: bf16[2,2,8,16], index: 9, kind: input, shape index: {}]   ;;  %s4809_s10 = inlined_call_operand.vmem [shape: f32[2,1,16], index: 10, kind: input, shape index: {}]   ;;  %s4810_s11 = inlined_call_operand.vmem [shape: f32[2,1,16], index: 11, kind: input, shape index: {}]   ;;  %s4811_s12 = inlined_call_operand.vmem [shape: f32[2,1,16], index: 12, kind: input, shape index: {}]   ;;  %s4812_s13 = inlined_call_operand.vmem [shape: f32[2,1,16], index: 13, kind: input, shape index: {}]   ;;  %s4813_s14 = inlined_call_operand.vmem [shape: f32[2,1,16], index: 14, kind: input, shape index: {}]   ;;  %s4814_s15 = inlined_call_operand.vmem [shape: bf16[2,16,16], index: 15, kind: input, shape index: {}]   ;;  %s4815_s16 = inlined_call_operand.vmem [shape: f32[2,1,16], index: 16, kind: input, shape index: {}]   ;;  %s4816_s17 = inlined_call_operand.vmem [shape: bf16[2,16,16], index: 17, kind: input, shape index: {}]   ;;  %s4817_s18 = inlined_call_operand.vmem [shape: f32[2,1,16], index: 18, kind: input, shape index: {}]   ;;  %s4818_s19 = inlined_call_operand.vmem [shape: bf16[64,4], index: 19, kind: input, shape index: {}]   ;;  %s4819_s20 = inlined_call_operand.vmem [shape: f32[1,4], index: 20, kind: input, shape index: {}]   ;;  %s4820_s21 = inlined_call_operand.hbm [shape: f32[2,1,4], index: 21, kind: output, shape index: {}]  }
   0x1   :  { %4840 = sst [smem:[#allocation23_spill]] %s4799_s0 }
   0x2   :  { %4841 = sst [smem:[#allocation24_spill]] %s4800_s1 }
   0x3   :  { %4842 = sst [smem:[#allocation25_spill]] %s4801_s2 }
   0x4   :  { %4843 = sst [smem:[#allocation26_spill]] %s4802_s3 }
   0x5   :  { %4844 = sst [smem:[#allocation27_spill]] %s4803_s4 }
   0x6   :  { %4845 = sst [smem:[#allocation28_spill]] %s4804_s5 }
   0x7   :  { %4846 = sst [smem:[#allocation29_spill]] %s4805_s6 }
   0x8   :  { %4847 = sst [smem:[#allocation30_spill]] %s4806_s7 }
   0x9   :  { %4848 = sst [smem:[#allocation31_spill]] %s4807_s8 }
   0xa   :  { %4849 = sst [smem:[#allocation32_spill]] %s4808_s9 }
   0xb   :  { %4850 = sst [smem:[#allocation33_spill]] %s4812_s13 }
   0xc   :  { %4851 = sst [smem:[#allocation34_spill]] %s4817_s18 }
   0xd   :  { %4852 = sst [smem:[#allocation35_spill]] %s4818_s19 }
   0xe   :  { %4853 = sst [smem:[#allocation36_spill]] %s4819_s20 }
   0xf   :  { %4854 = sst [smem:[#allocation37_spill]] %s4820_s21 }
  0x10   :  { %26 = vsyncpa [#allocation4], 0 }
  0x11   :  { %28 = vsyncpa [#allocation4 + $0x1], 0  ;;  %s4065_s2 = smov 0   ;;  %s4067_s25 = smov 0  }
  0x12   :  { %s4069_s26 = smov 0   ;;  %s4071_s27 = smov 0  }
  0x13   :  { %s4073_s3 = smov 0   ;;  %s4075_s28 = smov 0  }
  0x14   :  { %s4077_s29 = smov 0   ;;  %s4079_s0 = smov 0  }
  0x15 LB: > { %4855 = sst [smem:[#allocation6_spill]] %s3922_s2  ;;  %s3233_s4 = sadd.s32 4294967295, %s3950_s0   ;;  %s3950_s0 = sphi %s4079_s0, %s34_s0   ;;  %s3946_s29 = sphi %s4077_s29, %s4916_s29   ;;  %s3942_s28 = sphi %s4075_s28, %s4915_s28   ;;  %s3938_s3 = sphi %s4073_s3, %s4919_s3   ;;  %s3934_s27 = sphi %s4071_s27, %s4913_s27   ;;  %s3930_s26 = sphi %s4069_s26, %s4912_s26   ;;  %s3926_s25 = sphi %s4067_s25, %s4918_s25   ;;  %s3922_s2 = sphi %s4065_s2, %s4917_s2  }
  0x16   : > { %4856 = sst [smem:[#allocation7_spill]] %s3930_s26  ;;  %s3234_s30 = sadd.s32 4294967294, %s3950_s0  }
  0x17   : > { %4857 = sst [smem:[#allocation8_spill]] %s3934_s27  ;;  %s43_s5 = sadd.s32 1, %s3942_s28 }
  0x18   : > { %4858 = sst [smem:[#allocation9_spill]] %s3938_s3  ;;  %p44_p0 = scmp.ge.s32.totalorder %s43_s5, 2 }
  0x19   : > { %4859 = sst [smem:[#allocation10_spill]] %s3942_s28  ;;  %s46_s22 = sadd.s32 1, %s3946_s29 }
  0x1a   : > { %4860 = sst [smem:[#allocation11_spill]] %s3946_s29  ;;  %p589_p1 = scmp.ne.s32.totalorder %s3930_s26, %s3926_s25 }
  0x1b   : > { %4861 = sst [smem:[#allocation12_spill]] %s3950_s0  ;;  %p590_p2 = scmp.eq.s32.totalorder %s3233_s4, 3 }
  0x1c   : > { %s4921_s5 = smov (%p44_p0, %s43_s5), 0  ;;  %s4923_s22 = smov (!%p44_p0, %s46_s22), %s3946_s29 }
  0x1d   : > { %4862 = sst [smem:[#allocation13_spill]] %s4921_s5  ;;  %p4114_p3 = por %p590_p2, %p589_p1 }
  0x1e   : > { %p595_p4 = scmp.ne.s32.totalorder %s3926_s25, %s3922_s2  ;;  %p48_p5 = scmp.ge.s32.totalorder %s4923_s22, 2 }
  0x1f   : > { %s4863_s23 = scalar_select %p4114_p3, 1, 0 }
  0x20   : > { %p596_p6 = scmp.eq.s32.totalorder %s3234_s30, 3  ;;  %p3237_p7 = scmp.ge.s32.totalorder %s3950_s0, 1 }
  0x21   : > { %4864 = sst [smem:[#allocation14_spill]] %s4863_s23  ;;  %p746_p8 = scmp.lt.s32.totalorder %s3950_s0, 5 }
  0x22   : > { %s4925_s22 = smov (%p48_p5, %s4923_s22), 0  ;;  %p4124_p9 = por %p596_p6, %p595_p4 }
  0x23   : > { %4865 = sst [smem:[#allocation15_spill]] %s4925_s22  ;;  %p747_p10 = pnand %p3237_p7, %p746_p8 }
  0x24   : > { %s4866_s1 = scalar_select %p4124_p9, 1, 0 }
  0x25   : > { %s576_s24 = ssub.s32 %s3946_s29, %s4925_s22  ;;  %s579_s4 = sadd.s32 1, %s3930_s26 }
  0x26   : > { %4867 = sst [smem:[#allocation16_spill]] %s4866_s1  ;;  %p577_p11 = scmp.eq.s32.totalorder %s576_s24, 0 }
  0x27   : > { %750 = sbr.rel (%p747_p10) target bundleno = 4122 (0x101a), region = 104 }
  0x28   : > { %s4132_s5 = scalar_select %p577_p11, %s3930_s26, %s579_s4  }
  0x2a   : > { %4868 = sst [smem:[#allocation17_spill]] %s4132_s5 }
  0x2e   : > { %s3238_s28 = sshll.u32 %s3938_s3, 3  ;;  %p874_p13 = scmp.lt.s32.totalorder %s3934_s27, 1 }
  0x2f   : > { %p869_p12 = scmp.lt.s32.totalorder %s3238_s28, 15  ;;  %s4869_s29 = sld [smem:[#allocation23_spill]] }
  0x30   : > { %s4138_s2 = scalar_select %p874_p13, %s3934_s27, 1 }
  0x31   : > { %s4927_s28 = smov (!%p869_p12, %s3238_s28), 15  ;;  %s4870_s0 = sld [smem:[#allocation26_spill]] }
  0x32   : > { %s3239_s24 = sshll.u32 %s4927_s28, 3  ;;  %s3357_s30 = sshll.u32 %s4138_s2, 4 }
  0x33   : > { %s4872_s20 = sld [smem:[#allocation27_spill]]  ;;  %s4873_s18 = sld [smem:[#allocation28_spill]] }
  0x34   : > { %s4875_s6 = sld [smem:[#allocation29_spill]]  ;;  %s4877_s7 = sld [smem:[#allocation30_spill]] }
  0x35   : > { %s4143_s5 = scalar_lea.vmem %s4869_s29, %s3239_s24  ;;  %s3246_s29 = sshll.u32 %s4138_s2, 1 }
  0x36   : > { %s4878_s8 = sld [smem:[#allocation31_spill]]  ;;  %s4178_s27 = sshll.u32 %s4138_s2, 3 }
  0x37   : > { %s4149_s21 = scalar_lea.vmem %s4870_s0, %s3357_s30  ;;  %s4880_s9 = sld [smem:[#allocation32_spill]] }
  0x38   : > { %4871 = sst [smem:[#allocation18_spill]] %s4149_s21  ;;  %s925_s24 = scalar_lea.vmem %s4814_s15, %s4178_s27 }
  0x39   : > { %s4154_s19 = scalar_lea.vmem %s4872_s20, %s3357_s30  ;;  %s4159_s22 = scalar_lea.vmem %s4873_s18, %s3357_s30 }
  0x3a   : > { %4874 = sst [smem:[#allocation19_spill]] %s4159_s22  ;;  %s4165_s26 = scalar_lea.vmem %s4875_s6, %s3246_s29 }
  0x3b   : > { %4876 = sst [smem:[#allocation20_spill]] %s4165_s26  ;;  %s4170_s21 = scalar_lea.vmem %s4877_s7, %s3246_s29 }
  0x3c   : > { %s4175_s23 = scalar_lea.vmem %s4878_s8, %s3246_s29  ;;  %s928_s6 = scalar_lea.vmem %s4815_s16, %s4138_s2 }
  0x3d   : > { %4879 = sst [smem:[#allocation21_spill]] %s4175_s23  ;;  %s4184_s28 = scalar_lea.vmem %s4880_s9, %s4178_s27 }
  0x3e   : > { %4881 = sst [smem:[#allocation22_spill]] %s4184_s28  ;;  %s920_s9 = scalar_lea.vmem %s4813_s14, %s4138_s2 }
  0x3f   : > { %s933_s29 = scalar_lea.vmem %s4816_s17, %s4178_s27  ;;  %s4883_s8 = sld [smem:[#allocation34_spill]] }
  0x40   : > { %s4884_s18 = sand.u32 1, %s3926_s25   ;;  %s4885_s22 = sld [smem:[#allocation8_spill]] }
  0x41   : > { %s4224_s13 = scalar_lea.vmem [#allocation3], %s4884_s18 }
  0x45   : > { %s936_s23 = scalar_lea.vmem %s4883_s8, %s4138_s2 }
  0x46   : > { %p3255_p0 = scmp.ne.s32.totalorder %s4885_s22, 0 }
  0x47   : > { %s4886_s30 = sld [smem:[#allocation24_spill]] (!%p3255_p0)  ;;  %vm975_vm0 = vcmask (!%p3255_p0), 1041408   ;;  %v942_v1 = vld [vmem:[%s4143_s5] sm:$0xff] (!%p3255_p0)  ;;  %v943_v2 = vld [vmem:[%s4143_s5 + $0x8] sm:$0xff] (!%p3255_p0)  ;;  %vm962_vm1 = vcmask (!%p3255_p0), 31744   ;;  %v944_v7 = vld [vmem:[%s4143_s5 + $0x10] sm:$0xff] (!%p3255_p0) }
  0x48   : > { %941 = sbr.rel (%p3255_p0) target bundleno = 300 (0x12c), region = 108  ;;  %v950_v4 = vpack.c.bf16 (!%p3255_p0), %v943_v2, %v942_v1  ;;  %v946_v5 = vld [vmem:[%s4143_s5 + $0x20] sm:$0xff] (!%p3255_p0)  ;;  %v947_v6 = vld [vmem:[%s4143_s5 + $0x28] sm:$0xff] (!%p3255_p0)  ;;  %v945_v9 = vld [vmem:[%s4143_s5 + $0x18] sm:$0xff] (!%p3255_p0)  ;;  %s4887_s20 = sld [smem:[#allocation25_spill]] (!%p3255_p0)  ;;  %vm1044_vm2 = vcmask (!%p3255_p0), 130048  }
  0x49   : > { %v952_v8 = vpack.c.bf16 (!%p3255_p0), %v947_v6, %v946_v5  ;;  %v948_v10 = vld [vmem:[%s4143_s5 + $0x30] sm:$0xff] (!%p3255_p0)  ;;  %v949_v11 = vld [vmem:[%s4143_s5 + $0x38] sm:$0xff] (!%p3255_p0)  ;;  %v951_v12 = vpack.c.bf16 (!%p3255_p0), %v945_v9, %v944_v7 }
  0x4a   : > { %3457 = vmatprep.mubr.msk.bf16.mxu0 (!%p3255_p0), %vm962_vm1, %v950_v4  ;;  %v953_v13 = vpack.c.bf16 (!%p3255_p0), %v949_v11, %v948_v10 }
  0x4b   : > { %3461 = vmatprep.mubr.msk.bf16.mxu1 (!%p3255_p0), %vm962_vm1, %v952_v8 }
  0x4d   : > { %v954_v0 = vld [vmem:[%s4886_s30] sm:$0x3] (!%p3255_p0) }
  0x4e   : > { %3651 = vmatprep.subr.msk.bf16.mxu0 (!%p3255_p0), %vm975_vm0, %v954_v0  ;;  %3652 = vmatprep.subr.msk.bf16.mxu1 (!%p3255_p0), %vm975_vm0, %v954_v0  ;;  %v977_v3 = vsel (!%p3255_p0), %vm975_vm0, %v954_v0, 0  ;;  %v3256_v14 = vld [vmem:[%s4887_s20] ss:$0 sm:$0xff] (!%p3255_p0) }
  0x4f   : > { %3456 = vmatpush3.bf16.msra.mxu0 %v977_v3  ;;  %3642 = vmatpush3.bf16.msra.mxu1 %v977_v3 }
  0x52   : > { %3458 = vmatmul.mubr.msk.bf16.vlgmr.msra.gmra.mrb[0].mxu0 %vm962_vm1, %v951_v12  ;;  %3462 = vmatmul.mubr.msk.bf16.vlgmr.msra.gmra.mrb[0].mxu1 %vm962_vm1, %v953_v13 }
 0x125   : > { %v3459_v15 = vpop.f32.mrb[0].mxu0  ;;  %v3463_v16 = vpop.f32.mrb[0].mxu1 }
 0x126   : > { %v1022_v17 = vadd.f32 %v3459_v15, %v3256_v14  ;;  %v1038_v18 = vadd.f32 %v3463_v16, %v3256_v14  ;;  %v1013_v19 = vpop.f32.mrb[1].mxu0  ;;  %v1029_v20 = vpop.f32.mrb[1].mxu1 }
 0x127   : > { %v1014_v21 = vadd.f32 %v3256_v14, %v1013_v19  ;;  %v1030_v22 = vadd.f32 %v3256_v14, %v1029_v20  ;;  %v3460_v23 = vpop.f32.mrb[2].mxu0  ;;  %v3464_v24 = vpop.f32.mrb[2].mxu1 }
 0x128   : > { %1047 = vst.msk [vmem:[#allocation2 + $0x10] sm:$0xff] %vm1044_vm2, %v1022_v17  ;;  %1051 = vst.msk [vmem:[#allocation2 + $0x30] sm:$0xff] %vm1044_vm2, %v1038_v18  ;;  %v1025_v25 = vadd.f32 %v3460_v23, %v3256_v14  ;;  %v1041_v26 = vadd.f32 %v3464_v24, %v3256_v14  ;;  %v1016_v27 = vpop.f32.mrb[3].mxu0  ;;  %v1032_v28 = vpop.f32.mrb[3].mxu1 }
 0x129   : > { %1045 = vst.msk [vmem:[#allocation2] sm:$0xff] %vm1044_vm2, %v1014_v21  ;;  %1049 = vst.msk [vmem:[#allocation2 + $0x20] sm:$0xff] %vm1044_vm2, %v1030_v22  ;;  %v1017_v29 = vadd.f32 %v3256_v14, %v1016_v27  ;;  %v1033_v30 = vadd.f32 %v3256_v14, %v1032_v28 }
 0x12a   : > { %1048 = vst.msk [vmem:[#allocation2 + $0x18] sm:$0xff] %vm1044_vm2, %v1025_v25  ;;  %1052 = vst.msk [vmem:[#allocation2 + $0x38] sm:$0xff] %vm1044_vm2, %v1041_v26 }
 0x12b   : > { %1046 = vst.msk [vmem:[#allocation2 + $0x8] sm:$0xff] %vm1044_vm2, %v1017_v29  ;;  %1050 = vst.msk [vmem:[#allocation2 + $0x28] sm:$0xff] %vm1044_vm2, %v1033_v30 }
 0x12c PF: > { %s4888_s5 = sld [smem:[#allocation18_spill]]  ;;  %v3736_v31 = vld [vmem:[%s4154_s19] sm:$0xff]   ;;  %vm1080_vm3 = vcmask 130048   ;;  %s4889_s18 = sld [smem:[#allocation20_spill]]  ;;  %vm1330_vm4 = vcmask 64512   ;;  %vm1420_vm5 = vcmask 523264  }
 0x12d   : > { %3475 = vmatprep.subr.bf16.mxu1 %v3736_v31  ;;  %v3267_v46 = vld [vmem:[%s4170_s21] ss:$0 sm:$0xff]  ;;  %s4890_s4 = sld [smem:[#allocation19_spill]]  ;;  %s4891_s1 = sld [smem:[#allocation21_spill]]  ;;  %vm2129_vm6 = vcmask 1043456  }
 0x12e   : > { %3476 = vmatpush3.bf16.msra.mxu1 %v3736_v31  ;;  %s4893_s8 = scalar_lea.vmem %s4809_s10, %s4138_s2  ;;  %s4895_s20 = scalar_lea.vmem %s4811_s12, %s4138_s2 }
 0x12f   : > { %v1055_v34 = vld [vmem:[#allocation2 + $0x10] sm:$0xff] }
 0x130   : > { %v1053_v32 = vld [vmem:[#allocation2] sm:$0xff]  ;;  %v1059_v42 = vld [vmem:[#allocation2 + $0x30] sm:$0xff] }
 0x131   : > { %v1056_v36 = vld [vmem:[#allocation2 + $0x18] sm:$0xff]  ;;  %v1057_v37 = vld [vmem:[#allocation2 + $0x20] sm:$0xff] }
 0x132   : > { %v1054_v33 = vld [vmem:[#allocation2 + $0x8] sm:$0xff]  ;;  %v4256_v39 = vpack.c.bf16 %v1056_v36, %v1055_v34  ;;  %v3737_v41 = vld [vmem:[%s4888_s5] sm:$0xff]   ;;  %v1060_v43 = vld [vmem:[#allocation2 + $0x38] sm:$0xff] }
 0x133   : > { %v4254_v35 = vpack.c.bf16 %v1054_v33, %v1053_v32  ;;  %v1058_v38 = vld [vmem:[#allocation2 + $0x28] sm:$0xff]  ;;  %3465 = vmatprep.subr.bf16.mxu0 %v3737_v41  ;;  %v4269_v44 = vpack.c.bf16 %v1060_v43, %v1059_v42  ;;  %v3261_v49 = vld [vmem:[%s4889_s18] ss:$0 sm:$0xff] }
 0x134   : > { %v4258_v40 = vpack.c.bf16 %v1058_v38, %v1057_v37  ;;  %3466 = vmatpush3.bf16.msra.mxu0 %v3737_v41  ;;  %v3738_v27 = vld [vmem:[%s4890_s4] sm:$0xff]  }
 0x135   : > { %3477 = vmatprep.mubr.msk.bf16.mxu1 %vm1080_vm3, %v4254_v35  ;;  %3467 = vmatprep.mubr.msk.bf16.mxu0 %vm1080_vm3, %v4254_v35 }
 0x136   : > { %3478 = vmatmul.mubr.msk.bf16.vlgmr.msra.gmra.mrb[0].mxu1 %vm1080_vm3, %v4256_v39  ;;  %3485 = vmatprep.subr.bf16.mxu0 %v3738_v27 }
 0x137   : > { %3481 = vmatprep.mubr.msk.bf16.mxu1 %vm1080_vm3, %v4258_v40  ;;  %3468 = vmatmul.mubr.msk.bf16.vlgmr.msra.gmra.mrb[0].mxu0 %vm1080_vm3, %v4256_v39 }
 0x138   : > { %3471 = vmatprep.mubr.msk.bf16.mxu0 %vm1080_vm3, %v4258_v40  ;;  %3486 = vmatpush3.bf16.msra.mxu0 %v3738_v27 }
 0x13e   : > { %3482 = vmatmul.mubr.msk.bf16.gmra.mrb[4].mxu1 %vm1080_vm3, %v4269_v44 }
 0x13f   : > { %3472 = vmatmul.mubr.msk.bf16.gmra.mrb[4].mxu0 %vm1080_vm3, %v4269_v44 }
 0x140   : > { %3487 = vmatprep.mubr.msk.bf16.mxu0 %vm1080_vm3, %v4254_v35 }
 0x147   : > { %3488 = vmatmul.mubr.msk.bf16.vlgmr.msra.gmra.mrb[8].mxu0 %vm1080_vm3, %v4256_v39 }
 0x148   : > { %3491 = vmatprep.mubr.msk.bf16.mxu0 %vm1080_vm3, %v4258_v40 }
 0x14f   : > { %3492 = vmatmul.mubr.msk.bf16.gmra.mrb[12].mxu0 %vm1080_vm3, %v4269_v44 }
 0x209   : > { %v3479_v45 = vpop.f32.mrb[0].mxu1 }
 0x20a   : > { %v1211_v47 = vpop.f32.mrb[1].mxu1  ;;  %v1220_v50 = vadd.f32 %v3479_v45, %v3267_v46  ;;  %v3469_v55 = vpop.f32.mrb[0].mxu0 }
 0x20b   : > { %v3480_v48 = vpop.f32.mrb[2].mxu1  ;;  %v1212_v53 = vadd.f32 %v3267_v46, %v1211_v47  ;;  %v1136_v57 = vadd.f32 %v3469_v55, %v3261_v49  ;;  %v1127_v58 = vpop.f32.mrb[1].mxu0 }
 0x20c   : > { %v1223_v51 = vadd.f32 %v3480_v48, %v3267_v46  ;;  %v1214_v52 = vpop.f32.mrb[3].mxu1  ;;  %v1128_v60 = vadd.f32 %v3261_v49, %v1127_v58  ;;  %v3470_v61 = vpop.f32.mrb[2].mxu0  ;;  %v3739_v48 = vld [vmem:[%s4154_s19 + $0x8] sm:$0xff]   ;;  %s4892_s19 = sld [smem:[#allocation22_spill]] }
 0x20d   : > { %v1215_v54 = vadd.f32 %v3267_v46, %v1214_v52  ;;  %v1139_v62 = vadd.f32 %v3470_v61, %v3261_v49  ;;  %v1130_v63 = vpop.f32.mrb[3].mxu0 }
 0x20e   : > { %v1243_v56 = vpack.c.bf16 %v1223_v51, %v1220_v50  ;;  %v1131_v2 = vadd.f32 %v3261_v49, %v1130_v63 }
 0x20f   : > { %v1242_v59 = vpack.c.bf16 %v1215_v54, %v1212_v53  ;;  %v1159_v5 = vpack.c.bf16 %v1139_v62, %v1136_v57 }
 0x210   : > { %v1158_v8 = vpack.c.bf16 %v1131_v2, %v1128_v60  ;;  %v1347_v21 = vsel %vm1330_vm4, %v1243_v56, 0 }
 0x211   : > { %3653 = vmatprep.subr.msk.bf16.mxu1 %vm1330_vm4, %v1242_v59  ;;  %v1344_v0 = vsel %vm1330_vm4, %v1242_v59, 0  ;;  %v3483_v1 = vpop.f32.mrb[4].mxu1 }
 0x212   : > { %3496 = vmatpush3.bf16.xpose.msra.mxu1 %v1344_v0  ;;  %v1236_v3 = vadd.f32 %v3483_v1, %v3267_v46  ;;  %v1227_v4 = vpop.f32.mrb[5].mxu1  ;;  %3503 = vmatprep.mubr.msk.bf16.mxu1 %vm1330_vm4, %v1158_v8  ;;  %v3473_v12 = vpop.f32.mrb[4].mxu0 }
 0x213   : > { %3654 = vmatprep.subr.msk.bf16.mxu1 %vm1330_vm4, %v1243_v56  ;;  %v1228_v6 = vadd.f32 %v3267_v46, %v1227_v4  ;;  %v3484_v7 = vpop.f32.mrb[6].mxu1  ;;  %v1152_v14 = vadd.f32 %v3473_v12, %v3261_v49  ;;  %v1143_v15 = vpop.f32.mrb[5].mxu0 }
 0x214   : > { %v1239_v9 = vadd.f32 %v3484_v7, %v3267_v46  ;;  %v1230_v10 = vpop.f32.mrb[7].mxu1  ;;  %v1144_v17 = vadd.f32 %v3261_v49, %v1143_v15  ;;  %v3474_v18 = vpop.f32.mrb[6].mxu0 }
 0x215   : > { %v1231_v11 = vadd.f32 %v3267_v46, %v1230_v10  ;;  %v1155_v19 = vadd.f32 %v3474_v18, %v3261_v49  ;;  %v1146_v20 = vpop.f32.mrb[7].mxu0 }
 0x216   : > { %v1245_v13 = vpack.c.bf16 %v1239_v9, %v1236_v3  ;;  %v1147_v22 = vadd.f32 %v3261_v49, %v1146_v20  ;;  %v4326_v49 = vld [vmem:[%s4891_s1] ss:$0 sm:$0xff] }
 0x217   : > { %v1244_v16 = vpack.c.bf16 %v1231_v11, %v1228_v6  ;;  %v1161_v23 = vpack.c.bf16 %v1155_v19, %v1152_v14 }
 0x218   : > { %v1160_v24 = vpack.c.bf16 %v1147_v22, %v1144_v17  ;;  %v1353_v26 = vsel %vm1330_vm4, %v1245_v13, 0 }
 0x219   : > { %v1350_v25 = vsel %vm1330_vm4, %v1244_v16, 0 }
 0x21a   : > { %3498 = vmatpush3.bf16.xpose.msra.mxu1 %v1347_v21  ;;  %v3489_v50 = vpop.f32.mrb[8].mxu0 }
 0x21b   : > { %3655 = vmatprep.subr.msk.bf16.mxu1 %vm1330_vm4, %v1244_v16  ;;  %v1304_v51 = vadd.f32 %v3489_v50, %v4326_v49  ;;  %v1295_v52 = vpop.f32.mrb[9].mxu0 }
 0x21c   : > { %v1296_v53 = vadd.f32 %v4326_v49, %v1295_v52  ;;  %v3490_v54 = vpop.f32.mrb[10].mxu0  ;;  %v3299_v52 = vld [vmem:[%s4170_s21 + $0x1] ss:$0 sm:$0xff]  ;;  %s4897_s21 = sld [smem:[#allocation33_spill]] }
 0x21d   : > { %v1307_v55 = vadd.f32 %v3490_v54, %v4326_v49  ;;  %v1298_v56 = vpop.f32.mrb[11].mxu0 }
 0x21e   : > { %v1299_v57 = vadd.f32 %v4326_v49, %v1298_v56 }
 0x21f   : > { %v1327_v58 = vpack.c.bf16 %v1307_v55, %v1304_v51  ;;  %v4371_v51 = vld [vmem:[%s4888_s5 + $0x8] sm:$0xff]  }
 0x220   : > { %v1326_v59 = vpack.c.bf16 %v1299_v57, %v1296_v53 }
 0x222   : > { %3500 = vmatpush3.bf16.xpose.msra.mxu1 %v1350_v25  ;;  %v3493_v60 = vpop.f32.mrb[12].mxu0  ;;  %3511 = vmatprep.subr.bf16.mxu0 %v1326_v59  ;;  %s4898_s3 = scalar_lea.vmem %s4897_s21, %s4138_s2 }
 0x223   : > { %3656 = vmatprep.subr.msk.bf16.mxu1 %vm1330_vm4, %v1245_v13  ;;  %v1311_v61 = vpop.f32.mrb[13].mxu0  ;;  %3512 = vmatpush3.bf16.msra.mxu0 %v1326_v59 }
 0x224   : > { %3513 = vmatprep.subr.bf16.mxu0 %v1327_v58 }
 0x227   : > { %3514 = vmatpush3.bf16.msra.mxu0 %v1327_v58 }
 0x22a   : > { %3502 = vmatpush3.bf16.xpose.msra.mxu1 %v1353_v26 }
 0x22b   : > { %3537 = vmatprep.subr.bf16.mxu1 %v3739_v48 }
 0x231   : > { %3504 = vmatmul.mubr.msk.bf16.vlgmr.msra.gmra.mrb[8].mxu1 %vm1330_vm4, %v1159_v5 }
 0x232   : > { %3507 = vmatprep.mubr.msk.bf16.mxu1 %vm1330_vm4, %v1160_v24  ;;  %3538 = vmatpush3.bf16.msra.mxu1 %v3739_v48 }
 0x239   : > { %3508 = vmatmul.mubr.msk.bf16.gmra.mrb[12].mxu1 %vm1330_vm4, %v1161_v23 }
 0x23a   : > { %3539 = vmatprep.mubr.msk.bf16.mxu1 %vm1080_vm3, %v4254_v35 }
 0x241   : > { %3540 = vmatmul.mubr.msk.bf16.vlgmr.msra.gmra.mrb[16].mxu1 %vm1080_vm3, %v4256_v39 }
 0x242   : > { %3543 = vmatprep.mubr.msk.bf16.mxu1 %vm1080_vm3, %v4258_v40 }
 0x249   : > { %3544 = vmatmul.mubr.msk.bf16.gmra.mrb[20].mxu1 %vm1080_vm3, %v4269_v44 }
 0x304   : > { %v3505_v28 = vpop.f32.mrb[8].mxu1 }
 0x305   : > { %v1389_v29 = vpop.f32.mrb[9].mxu1  ;;  %v1427_v30 = vsel %vm1420_vm5, %v3505_v28, -inf }
 0x306   : > { %1428 = vmax.xlane.f32.xlu1 %v1427_v30  ;;  %v3506_v31 = vpop.f32.mrb[10].mxu1  ;;  %v1421_v32 = vsel %vm1420_vm5, %v1389_v29, -inf }
 0x307   : > { %1422 = vmax.xlane.f32.xlu0 %v1421_v32  ;;  %v1392_v33 = vpop.f32.mrb[11].mxu1  ;;  %v1430_v34 = vsel %vm1420_vm5, %v3506_v31, -inf }
 0x308   : > { %v1424_v36 = vsel %vm1420_vm5, %v1392_v33, -inf }
 0x30a   : > { %1431 = vmax.xlane.f32.xlu1 %v1430_v34 }
 0x30b   : > { %1425 = vmax.xlane.f32.xlu0 %v1424_v36 }
 0x30c   : > { %v4308_v37 = vpop.f32.mrb[12].mxu1 }
 0x30d   : > { %v1405_v38 = vpop.f32.mrb[13].mxu1  ;;  %v1439_v46 = vsel %vm1420_vm5, %v4308_v37, -inf }
 0x30e   : > { %v4310_v41 = vpop.f32.mrb[14].mxu1  ;;  %v1433_v42 = vsel %vm1420_vm5, %v1405_v38, -inf }
 0x30f   : > { %1434 = vmax.xlane.f32.xlu0 %v1433_v42  ;;  %v1408_v43 = vpop.f32.mrb[15].mxu1  ;;  %v1442_v47 = vsel %vm1420_vm5, %v4310_v41, -inf  ;;  %v3494_v42 = vpop.f32.mrb[14].mxu0 }
 0x310   : > { %v1436_v45 = vsel %vm1420_vm5, %v1408_v43, -inf }
 0x311   : > { %1437 = vmax.xlane.f32.xlu1 %v1436_v45  ;;  %v1323_v45 = vadd.f32 %v3494_v42, %v4326_v49 }
 0x313   : > { %1440 = vmax.xlane.f32.xlu0 %v1439_v46  ;;  %v1314_v46 = vpop.f32.mrb[15].mxu0 }
 0x314   : > { %v3541_v53 = vpop.f32.mrb[16].mxu1 }
 0x315   : > { %1443 = vmax.xlane.f32.xlu1 %v1442_v47  ;;  %v1315_v47 = vadd.f32 %v4326_v49, %v1314_v46  ;;  %v1741_v54 = vadd.f32 %v3541_v53, %v3299_v52  ;;  %v1732_v55 = vpop.f32.mrb[17].mxu1 }
 0x316   : > { %v1733_v56 = vadd.f32 %v3299_v52, %v1732_v55  ;;  %v3542_v57 = vpop.f32.mrb[18].mxu1 }
 0x317   : > { %v1744_v58 = vadd.f32 %v3542_v57, %v3299_v52  ;;  %v1735_v59 = vpop.f32.mrb[19].mxu1  ;;  %v3290_v57 = vld [vmem:[%s4889_s18 + $0x1] ss:$0 sm:$0xff] }
 0x393   : > { %v1429_v62 = vpop.xlane.xlu1 %1428 }
 0x394   : > { %v1447_v63 = vsub.f32 %v3505_v28, %v1429_v62  ;;  %v1423_v0 = vpop.xlane.xlu0 %1422 }
 0x395   : > { %v1445_v1 = vsub.f32 %v1389_v29, %v1423_v0 }
 0x396   : > { %v1457_v2 = vmul.f32 1.442695, %v1447_v63  ;;  %v3545_v63 = vpop.f32.mrb[20].mxu1 }
 0x397   : > { %v1453_v3 = vmul.f32 1.442695, %v1445_v1  ;;  %v1432_v4 = vpop.xlane.xlu1 %1431  ;;  %v1757_v0 = vadd.f32 %v3545_v63, %v3299_v52  ;;  %v1748_v1 = vpop.f32.mrb[21].mxu1 }
 0x398   : > { %v1448_v5 = vsub.f32 %v3506_v31, %v1432_v4  ;;  %v1426_v6 = vpop.xlane.xlu0 %1425 }
 0x399   : > { %3744 = vpow2.f32 %v1453_v3  ;;  %v1446_v7 = vsub.f32 %v1392_v33, %v1426_v6  ;;  %v3546_v3 = vpop.f32.mrb[22].mxu1 }
 0x39a   : > { %3746 = vpow2.f32 %v1457_v2  ;;  %v1459_v8 = vmul.f32 1.442695, %v1448_v5  ;;  %v1749_v2 = vadd.f32 %v3299_v52, %v1748_v1  ;;  %v1760_v4 = vadd.f32 %v3546_v3, %v3299_v52  ;;  %v1751_v5 = vpop.f32.mrb[23].mxu1 }
 0x39b   : > { %v1455_v9 = vmul.f32 1.442695, %v1446_v7  ;;  %v1752_v6 = vadd.f32 %v3299_v52, %v1751_v5 }
 0x39c   : > { %v1435_v10 = vpop.xlane.xlu0 %1434  ;;  %v1766_v7 = vpack.c.bf16 %v1760_v4, %v1757_v0 }
 0x39d   : > { %3748 = vpow2.f32 %v1455_v9  ;;  %v1449_v11 = vsub.f32 %v1405_v38, %v1435_v10  ;;  %v1320_v38 = vadd.f32 %v3493_v60, %v4326_v49  ;;  %v1736_v60 = vadd.f32 %v3299_v52, %v1735_v59 }
 0x39e   : > { %v1438_v12 = vpop.xlane.xlu1 %1437  ;;  %3750 = vpow2.f32 %v1459_v8  ;;  %v1765_v9 = vpack.c.bf16 %v1752_v6, %v1749_v2 }
 0x39f   : > { %v1461_v13 = vmul.f32 1.442695, %v1449_v11  ;;  %v1450_v14 = vsub.f32 %v1408_v43, %v1438_v12  ;;  %v1329_v48 = vpack.c.bf16 %v1323_v45, %v1320_v38 }
 0x3a0   : > { %v1441_v15 = vpop.xlane.xlu0 %1440  ;;  %v1872_v10 = vsel %vm1330_vm4, %v1765_v9, 0 }
 0x3a1   : > { %3752 = vpow2.f32 %v1461_v13  ;;  %v1463_v16 = vmul.f32 1.442695, %v1450_v14  ;;  %v1451_v17 = vsub.f32 %v4308_v37, %v1441_v15 }
 0x3a2   : > { %v1444_v18 = vpop.xlane.xlu1 %1443 }
 0x3a3   : > { %v4333_v19 = vpop.eup %3744  ;;  %3754 = vpow2.f32 %v1463_v16  ;;  %v1465_v20 = vmul.f32 1.442695, %v1451_v17  ;;  %v1452_v21 = vsub.f32 %v4310_v41, %v1444_v18  ;;  %v1312_v41 = vadd.f32 %v4326_v49, %v1311_v61 }
 0x3a4   : > { %v1469_v22 = vsel %vm1420_vm5, %v4333_v19, 0.0  ;;  %v4338_v23 = vpop.eup %3746  ;;  %v1764_v49 = vpack.c.bf16 %v1744_v58, %v1741_v54  ;;  %v1763_v61 = vpack.c.bf16 %v1736_v60, %v1733_v56 }
 0x3a5   : > { %3756 = vpow2.f32 %v1465_v20  ;;  %v1467_v24 = vmul.f32 1.442695, %v1452_v21  ;;  %1470 = vadd.xlane.f32.xlu0 %v1469_v22  ;;  %v1475_v26 = vsel %vm1420_vm5, %v4338_v23, 0.0  ;;  %v1328_v50 = vpack.c.bf16 %v1315_v47, %v1312_v41 }
 0x3a6   : > { %3657 = vmatprep.subr.msk.bf16.mxu1 %vm1330_vm4, %v1763_v61  ;;  %v1866_v62 = vsel %vm1330_vm4, %v1763_v61, 0  ;;  %v1869_v8 = vsel %vm1330_vm4, %v1764_v49, 0 }
 0x3a7   : > { %v4340_v25 = vpop.eup %3748  ;;  %3758 = vpow2.f32 %v1467_v24  ;;  %3515 = vmatprep.subr.bf16.mxu0 %v1328_v50  ;;  %3558 = vmatpush3.bf16.xpose.msra.mxu1 %v1866_v62 }
 0x3a8   : > { %v1472_v27 = vsel %vm1420_vm5, %v4340_v25, 0.0  ;;  %v4346_v28 = vpop.eup %3750  ;;  %3516 = vmatpush3.bf16.msra.mxu0 %v1328_v50  ;;  %3658 = vmatprep.subr.msk.bf16.mxu1 %vm1330_vm4, %v1764_v49 }
 0x3a9   : > { %1476 = vadd.xlane.f32.xlu0 %v1475_v26  ;;  %1473 = vadd.xlane.f32.xlu1 %v1472_v27  ;;  %v1478_v31 = vsel %vm1420_vm5, %v4346_v28, 0.0 }
 0x3aa   : > { %3517 = vmatprep.subr.bf16.mxu0 %v1329_v48 }
 0x3ab   : > { %v4348_v29 = vpop.eup %3752 }
 0x3ac   : > { %v1481_v30 = vsel %vm1420_vm5, %v4348_v29, 0.0  ;;  %3518 = vmatpush3.bf16.msra.mxu0 %v1329_v48 }
 0x3ad   : > { %v4354_v32 = vpop.eup %3754  ;;  %1482 = vadd.xlane.f32.xlu0 %v1481_v30  ;;  %1479 = vadd.xlane.f32.xlu1 %v1478_v31 }
 0x3ae   : > { %v1484_v36 = vsel %vm1420_vm5, %v4354_v32, 0.0  ;;  %3527 = vmatprep.subr.bf16.mxu0 %v4371_v51 }
 0x3af   : > { %v4356_v33 = vpop.eup %3756  ;;  %3560 = vmatpush3.bf16.xpose.msra.mxu1 %v1869_v8 }
 0x3b0   : > { %v1487_v34 = vsel %vm1420_vm5, %v4356_v33, 0.0  ;;  %3659 = vmatprep.subr.msk.bf16.mxu1 %vm1330_vm4, %v1765_v9 }
 0x3b1   : > { %v4362_v37 = vpop.eup %3758  ;;  %1488 = vadd.xlane.f32.xlu0 %v1487_v34  ;;  %1485 = vadd.xlane.f32.xlu1 %v1484_v36 }
 0x3b2   : > { %v1490_v43 = vsel %vm1420_vm5, %v4362_v37, 0.0 }
 0x3b5   : > { %1491 = vadd.xlane.f32.xlu1 %v1490_v43 }
 0x3b7   : > { %3562 = vmatpush3.bf16.xpose.msra.mxu1 %v1872_v10 }
 0x3b8   : > { %3660 = vmatprep.subr.msk.bf16.mxu1 %vm1330_vm4, %v1766_v7 }
 0x432   : > { %v1471_v11 = vpop.xlane.xlu0 %1470 }
 0x433   : > { %3760 = vrcp.f32 %v1471_v11 }
 0x436   : > { %v1477_v12 = vpop.xlane.xlu0 %1476  ;;  %v1474_v13 = vpop.xlane.xlu1 %1473 }
 0x437   : > { %3762 = vrcp.f32 %v1474_v13 }
 0x438   : > { %3764 = vrcp.f32 %v1477_v12  ;;  %v3741_v12 = vld [vmem:[%s4890_s4 + $0x8] sm:$0xff]  }
 0x43a   : > { %v1483_v14 = vpop.xlane.xlu0 %1482  ;;  %v1480_v15 = vpop.xlane.xlu1 %1479 }
 0x43b   : > { %3766 = vrcp.f32 %v1480_v15 }
 0x43c   : > { %3768 = vrcp.f32 %v1483_v14 }
 0x43d   : > { %v3761_v18 = vpop.eup %3760 }
 0x43e   : > { %v1489_v16 = vpop.xlane.xlu0 %1488  ;;  %v1486_v17 = vpop.xlane.xlu1 %1485  ;;  %v1501_v22 = vmul.f32 %v3761_v18, %v4333_v19 }
 0x43f   : > { %3770 = vrcp.f32 %v1486_v17 }
 0x440   : > { %3772 = vrcp.f32 %v1489_v16 }
 0x441   : > { %v3763_v20 = vpop.eup %3762 }
 0x442   : > { %v1492_v21 = vpop.xlane.xlu1 %1491  ;;  %v1502_v24 = vmul.f32 %v3763_v20, %v4340_v25  ;;  %v3765_v26 = vpop.eup %3764 }
 0x443   : > { %3774 = vrcp.f32 %v1492_v21  ;;  %v1503_v31 = vmul.f32 %v3765_v26, %v4338_v23 }
 0x444   : > { %v1509_v27 = vpack.c.bf16 %v1502_v24, %v1501_v22 }
 0x445   : > { %v3767_v30 = vpop.eup %3766 }
 0x446   : > { %v1504_v34 = vmul.f32 %v3767_v30, %v4346_v28  ;;  %3519 = vmatprep.mubr.msk.bf16.mxu0 %vm1420_vm5, %v1509_v27  ;;  %v3769_v36 = vpop.eup %3768 }
 0x447   : > { %v1505_v43 = vmul.f32 %v3769_v36, %v4348_v29  ;;  %v1875_v29 = vsel %vm1330_vm4, %v1766_v7, 0 }
 0x448   : > { %v1510_v38 = vpack.c.bf16 %v1504_v34, %v1503_v31  ;;  %3564 = vmatpush3.bf16.xpose.msra.mxu1 %v1875_v29  ;;  %v3308_v31 = vld [vmem:[%s4891_s1 + $0x1] ss:$0 sm:$0xff] }
 0x449   : > { %v3771_v41 = vpop.eup %3770 }
 0x44a   : > { %v3773_v42 = vpop.eup %3772  ;;  %3520 = vmatmul.mubr.msk.bf16.vlgmr.msra.gmra.mrb[16].mxu0 %vm1420_vm5, %v1510_v38  ;;  %v1506_v19 = vmul.f32 %v3771_v41, %v4354_v32 }
 0x44b   : > { %3528 = vmatpush3.bf16.msra.mxu0 %v4371_v51  ;;  %v1507_v23 = vmul.f32 %v3773_v42, %v4356_v33 }
 0x44c   : > { %v1511_v45 = vpack.c.bf16 %v1506_v19, %v1505_v43  ;;  %3547 = vmatprep.subr.bf16.mxu0 %v3741_v12 }
 0x44d   : > { %v3775_v25 = vpop.eup %3774 }
 0x44e   : > { %v1508_v28 = vmul.f32 %v3775_v25, %v4362_v37  ;;  %3523 = vmatprep.mubr.msk.bf16.mxu0 %vm1420_vm5, %v1511_v45 }
 0x450   : > { %v1512_v46 = vpack.c.bf16 %v1508_v28, %v1507_v23 }
 0x452   : > { %3524 = vmatmul.mubr.msk.bf16.gmra.mrb[20].mxu0 %vm1420_vm5, %v1512_v46 }
 0x453   : > { %3529 = vmatprep.mubr.msk.bf16.mxu0 %vm1080_vm3, %v4254_v35 }
 0x45a   : > { %3530 = vmatmul.mubr.msk.bf16.vlgmr.msra.gmra.mrb[24].mxu0 %vm1080_vm3, %v4256_v39 }
 0x45b   : > { %3533 = vmatprep.mubr.msk.bf16.mxu0 %vm1080_vm3, %v4258_v40  ;;  %3548 = vmatpush3.bf16.msra.mxu0 %v3741_v12 }
 0x462   : > { %3534 = vmatmul.mubr.msk.bf16.gmra.mrb[28].mxu0 %vm1080_vm3, %v4269_v44 }
 0x463   : > { %3549 = vmatprep.mubr.msk.bf16.mxu0 %vm1080_vm3, %v4254_v35 }
 0x46a   : > { %3550 = vmatmul.mubr.msk.bf16.vlgmr.msra.gmra.mrb[32].mxu0 %vm1080_vm3, %v4256_v39 }
 0x46b   : > { %3553 = vmatprep.mubr.msk.bf16.mxu0 %vm1080_vm3, %v4258_v40 }
 0x472   : > { %3554 = vmatmul.mubr.msk.bf16.gmra.mrb[36].mxu0 %vm1080_vm3, %v4269_v44 }
 0x51d   : > { %v4406_v32 = vpop.f32.mrb[16].mxu0 }
 0x51e   : > { %v4408_v33 = vpop.f32.mrb[17].mxu0 }
 0x51f   : > { %v4410_v37 = vpop.f32.mrb[18].mxu0 }
 0x520   : > { %v1591_v47 = vpack.c.bf16 %v4410_v37, %v4406_v32  ;;  %v4414_v48 = vpop.f32.mrb[19].mxu0 }
 0x521   : > { %v1590_v50 = vpack.c.bf16 %v4414_v48, %v4408_v33  ;;  %v3331_v33 = vld [vmem:[%s4893_s8] ss:$0 sm:$0xff] }
 0x525   : > { %v4418_v51 = vpop.f32.mrb[20].mxu0 }
 0x526   : > { %v4420_v35 = vpop.f32.mrb[21].mxu0 }
 0x527   : > { %v4422_v52 = vpop.f32.mrb[22].mxu0 }
 0x528   : > { %v1593_v53 = vpack.c.bf16 %v4422_v52, %v4418_v51  ;;  %v4426_v54 = vpop.f32.mrb[23].mxu0  ;;  %v3841_v51 = vld [vmem:[#allocation2 + $0x8] sm:$0xff] }
 0x529   : > { %v1592_v55 = vpack.c.bf16 %v4426_v54, %v4420_v35  ;;  %v3840_v54 = vld [vmem:[#allocation2] sm:$0xff] }
 0x52d   : > { %v3531_v56 = vpop.f32.mrb[24].mxu0 }
 0x52e   : > { %v1646_v58 = vpop.f32.mrb[25].mxu0  ;;  %v1655_v60 = vadd.f32 %v3531_v56, %v3290_v57 }
 0x52f   : > { %v3532_v59 = vpop.f32.mrb[26].mxu0  ;;  %v1647_v62 = vadd.f32 %v3290_v57, %v1646_v58 }
 0x530   : > { %v1658_v49 = vadd.f32 %v3532_v59, %v3290_v57  ;;  %v1649_v61 = vpop.f32.mrb[27].mxu0 }
 0x531   : > { %v1650_v63 = vadd.f32 %v3290_v57, %v1649_v61 }
 0x532   : > { %v1678_v0 = vpack.c.bf16 %v1658_v49, %v1655_v60 }
 0x533   : > { %v1677_v1 = vpack.c.bf16 %v1650_v63, %v1647_v62 }
 0x535   : > { %v3535_v2 = vpop.f32.mrb[28].mxu0  ;;  %3565 = vmatprep.mubr.msk.bf16.mxu1 %vm1330_vm4, %v1677_v1 }
 0x536   : > { %v1662_v3 = vpop.f32.mrb[29].mxu0  ;;  %3566 = vmatmul.mubr.msk.bf16.vlgmr.msra.gmra.mrb[24].mxu1 %vm1330_vm4, %v1678_v0  ;;  %v1671_v5 = vadd.f32 %v3535_v2, %v3290_v57 }
 0x537   : > { %v3536_v4 = vpop.f32.mrb[30].mxu0  ;;  %v1663_v8 = vadd.f32 %v3290_v57, %v1662_v3 }
 0x538   : > { %v1674_v6 = vadd.f32 %v3536_v4, %v3290_v57  ;;  %v1665_v7 = vpop.f32.mrb[31].mxu0 }
 0x539   : > { %v1666_v9 = vadd.f32 %v3290_v57, %v1665_v7 }
 0x53a   : > { %v1680_v10 = vpack.c.bf16 %v1674_v6, %v1671_v5 }
 0x53b   : > { %v1679_v11 = vpack.c.bf16 %v1666_v9, %v1663_v8 }
 0x53d   : > { %3569 = vmatprep.mubr.msk.bf16.mxu1 %vm1330_vm4, %v1679_v11  ;;  %v3551_v34 = vpop.f32.mrb[32].mxu0 }
 0x53e   : > { %3570 = vmatmul.mubr.msk.bf16.gmra.mrb[28].mxu1 %vm1330_vm4, %v1680_v10  ;;  %v1827_v36 = vadd.f32 %v3551_v34, %v3308_v31  ;;  %v1818_v38 = vpop.f32.mrb[33].mxu0 }
 0x53f   : > { %v1819_v41 = vadd.f32 %v3308_v31, %v1818_v38  ;;  %v3552_v42 = vpop.f32.mrb[34].mxu0 }
 0x540   : > { %v1830_v43 = vadd.f32 %v3552_v42, %v3308_v31  ;;  %v1821_v19 = vpop.f32.mrb[35].mxu0 }
 0x541   : > { %v1822_v25 = vadd.f32 %v3308_v31, %v1821_v19 }
 0x542   : > { %v1850_v45 = vpack.c.bf16 %v1830_v43, %v1827_v36 }
 0x543   : > { %v1849_v23 = vpack.c.bf16 %v1822_v25, %v1819_v41 }
 0x545   : > { %v3555_v28 = vpop.f32.mrb[36].mxu0  ;;  %3573 = vmatprep.subr.bf16.mxu0 %v1849_v23 }
 0x546   : > { %v1843_v46 = vadd.f32 %v3555_v28, %v3308_v31  ;;  %v1834_v29 = vpop.f32.mrb[37].mxu0  ;;  %3574 = vmatpush3.bf16.msra.mxu0 %v1849_v23 }
 0x547   : > { %v1835_v56 = vadd.f32 %v3308_v31, %v1834_v29  ;;  %v3556_v57 = vpop.f32.mrb[38].mxu0  ;;  %3575 = vmatprep.subr.bf16.mxu0 %v1850_v45 }
 0x548   : > { %v1846_v58 = vadd.f32 %v3556_v57, %v3308_v31  ;;  %v1837_v59 = vpop.f32.mrb[39].mxu0 }
 0x549   : > { %v1838_v60 = vadd.f32 %v3308_v31, %v1837_v59 }
 0x54a   : > { %v1852_v49 = vpack.c.bf16 %v1846_v58, %v1843_v46  ;;  %3576 = vmatpush3.bf16.msra.mxu0 %v1850_v45  ;;  %v3322_v45 = vld [vmem:[%s4892_s19 + $0x4] sm:$0xf] }
 0x54b   : > { %v1851_v61 = vpack.c.bf16 %v1838_v60, %v1835_v56 }
 0x54d   : > { %3577 = vmatprep.subr.bf16.mxu0 %v1851_v61 }
 0x54e   : > { %3578 = vmatpush3.bf16.msra.mxu0 %v1851_v61 }
 0x54f   : > { %3579 = vmatprep.subr.bf16.mxu0 %v1852_v49 }
 0x552   : > { %3580 = vmatpush3.bf16.msra.mxu0 %v1852_v49 }
 0x553   : > { %3661 = vmatprep.subr.msk.bf16.mxu0 %vm2129_vm6, %v3322_v45 }
 0x609   : > { %v4442_v13 = vpop.f32.mrb[24].mxu1 }
 0x60a   : > { %v1911_v14 = vpop.f32.mrb[25].mxu1  ;;  %v1948_v39 = vsel %vm1420_vm5, %v4442_v13, -inf }
 0x60b   : > { %v4444_v15 = vpop.f32.mrb[26].mxu1  ;;  %v1942_v16 = vsel %vm1420_vm5, %v1911_v14, -inf }
 0x60c   : > { %1943 = vmax.xlane.f32.xlu0 %v1942_v16  ;;  %v1914_v17 = vpop.f32.mrb[27].mxu1  ;;  %v1951_v44 = vsel %vm1420_vm5, %v4444_v15, -inf }
 0x60d   : > { %v1945_v18 = vsel %vm1420_vm5, %v1914_v17, -inf }
 0x60e   : > { %1946 = vmax.xlane.f32.xlu1 %v1945_v18 }
 0x610   : > { %1949 = vmax.xlane.f32.xlu0 %v1948_v39 }
 0x611   : > { %v4450_v40 = vpop.f32.mrb[28].mxu1 }
 0x612   : > { %1952 = vmax.xlane.f32.xlu1 %v1951_v44  ;;  %v1927_v20 = vpop.f32.mrb[29].mxu1  ;;  %v1960_v27 = vsel %vm1420_vm5, %v4450_v40, -inf }
 0x613   : > { %v4454_v21 = vpop.f32.mrb[30].mxu1  ;;  %v1954_v22 = vsel %vm1420_vm5, %v1927_v20, -inf }
 0x614   : > { %1955 = vmax.xlane.f32.xlu0 %v1954_v22  ;;  %v1930_v24 = vpop.f32.mrb[31].mxu1  ;;  %v1963_v30 = vsel %vm1420_vm5, %v4454_v21, -inf }
 0x615   : > { %v1957_v26 = vsel %vm1420_vm5, %v1930_v24, -inf }
 0x616   : > { %1958 = vmax.xlane.f32.xlu1 %v1957_v26 }
 0x618   : > { %1961 = vmax.xlane.f32.xlu0 %v1960_v27 }
 0x61a   : > { %1964 = vmax.xlane.f32.xlu1 %v1963_v30 }
 0x699   : > { %v1944_v62 = vpop.xlane.xlu0 %1943 }
 0x69a   : > { %v1966_v63 = vsub.f32 %v1911_v14, %v1944_v62 }
 0x69b   : > { %v1947_v0 = vpop.xlane.xlu1 %1946 }
 0x69c   : > { %v1974_v1 = vmul.f32 1.442695, %v1966_v63  ;;  %v1967_v2 = vsub.f32 %v1914_v17, %v1947_v0 }
 0x69d   : > { %v1950_v3 = vpop.xlane.xlu0 %1949 }
 0x69e   : > { %3776 = vpow2.f32 %v1974_v1  ;;  %v1976_v4 = vmul.f32 1.442695, %v1967_v2  ;;  %v1968_v5 = vsub.f32 %v4442_v13, %v1950_v3 }
 0x69f   : > { %v1953_v6 = vpop.xlane.xlu1 %1952 }
 0x6a0   : > { %3778 = vpow2.f32 %v1976_v4  ;;  %v1978_v7 = vmul.f32 1.442695, %v1968_v5  ;;  %v1969_v8 = vsub.f32 %v4444_v15, %v1953_v6  ;;  %v2131_v6 = vsel %vm2129_vm6, %v3322_v45, 0 }
 0x6a1   : > { %v1956_v9 = vpop.xlane.xlu0 %1955 }
 0x6a2   : > { %3780 = vpow2.f32 %v1978_v7  ;;  %v1980_v10 = vmul.f32 1.442695, %v1969_v8  ;;  %v1970_v11 = vsub.f32 %v1927_v20, %v1956_v9 }
 0x6a3   : > { %v1959_v12 = vpop.xlane.xlu1 %1958 }
 0x6a4   : > { %3782 = vpow2.f32 %v1980_v10  ;;  %v1982_v14 = vmul.f32 1.442695, %v1970_v11  ;;  %v1971_v16 = vsub.f32 %v1930_v24, %v1959_v12 }
 0x6a5   : > { %v1962_v18 = vpop.xlane.xlu0 %1961 }
 0x6a6   : > { %3784 = vpow2.f32 %v1982_v14  ;;  %v1984_v17 = vmul.f32 1.442695, %v1971_v16  ;;  %v1972_v39 = vsub.f32 %v4450_v40, %v1962_v18 }
 0x6a7   : > { %v1965_v44 = vpop.xlane.xlu1 %1964 }
 0x6a8   : > { %v3777_v13 = vpop.eup %3776  ;;  %3786 = vpow2.f32 %v1984_v17  ;;  %v1986_v22 = vmul.f32 1.442695, %v1972_v39  ;;  %v1973_v26 = vsub.f32 %v4454_v21, %v1965_v44  ;;  %v1594_v17 = vld [vmem:[%s4892_s19] sm:$0xf] }
 0x6a9   : > { %v1990_v15 = vsel %vm1420_vm5, %v3777_v13, 0.0 }
 0x6aa   : > { %v3779_v27 = vpop.eup %3778  ;;  %3788 = vpow2.f32 %v1986_v22  ;;  %v1988_v20 = vmul.f32 1.442695, %v1973_v26  ;;  %1991 = vadd.xlane.f32.xlu0 %v1990_v15 }
 0x6ab   : > { %v1993_v30 = vsel %vm1420_vm5, %v3779_v27, 0.0 }
 0x6ac   : > { %v3781_v24 = vpop.eup %3780  ;;  %3790 = vpow2.f32 %v1988_v20  ;;  %1994 = vadd.xlane.f32.xlu1 %v1993_v30 }
 0x6ad   : > { %v1996_v31 = vsel %vm1420_vm5, %v3781_v24, 0.0 }
 0x6ae   : > { %v3783_v40 = vpop.eup %3782  ;;  %1997 = vadd.xlane.f32.xlu0 %v1996_v31 }
 0x6af   : > { %v1999_v34 = vsel %vm1420_vm5, %v3783_v40, 0.0 }
 0x6b0   : > { %v3785_v36 = vpop.eup %3784  ;;  %2000 = vadd.xlane.f32.xlu1 %v1999_v34 }
 0x6b1   : > { %v2002_v21 = vsel %vm1420_vm5, %v3785_v36, 0.0 }
 0x6b2   : > { %v3787_v38 = vpop.eup %3786  ;;  %2003 = vadd.xlane.f32.xlu0 %v2002_v21 }
 0x6b3   : > { %v2005_v41 = vsel %vm1420_vm5, %v3787_v38, 0.0 }
 0x6b4   : > { %v3789_v42 = vpop.eup %3788  ;;  %2006 = vadd.xlane.f32.xlu1 %v2005_v41 }
 0x6b5   : > { %v2008_v43 = vsel %vm1420_vm5, %v3789_v42, 0.0 }
 0x6b6   : > { %v3791_v19 = vpop.eup %3790  ;;  %2009 = vadd.xlane.f32.xlu0 %v2008_v43 }
 0x6b7   : > { %v2011_v25 = vsel %vm1420_vm5, %v3791_v19, 0.0 }
 0x6b8   : > { %2012 = vadd.xlane.f32.xlu1 %v2011_v25 }
 0x737   : > { %v1992_v23 = vpop.xlane.xlu0 %1991 }
 0x738   : > { %3792 = vrcp.f32 %v1992_v23 }
 0x739   : > { %v1995_v28 = vpop.xlane.xlu1 %1994 }
 0x73a   : > { %3794 = vrcp.f32 %v1995_v28 }
 0x73b   : > { %v1998_v46 = vpop.xlane.xlu0 %1997 }
 0x73c   : > { %3796 = vrcp.f32 %v1998_v46 }
 0x73d   : > { %v2001_v29 = vpop.xlane.xlu1 %2000 }
 0x73e   : > { %3798 = vrcp.f32 %v2001_v29 }
 0x73f   : > { %v2004_v56 = vpop.xlane.xlu0 %2003 }
 0x740   : > { %3800 = vrcp.f32 %v2004_v56 }
 0x741   : > { %v2007_v57 = vpop.xlane.xlu1 %2006 }
 0x742   : > { %v3793_v58 = vpop.eup %3792  ;;  %3802 = vrcp.f32 %v2007_v57 }
 0x743   : > { %v2010_v59 = vpop.xlane.xlu0 %2009  ;;  %v2022_v61 = vmul.f32 %v3793_v58, %v3777_v13 }
 0x744   : > { %v3795_v60 = vpop.eup %3794  ;;  %3804 = vrcp.f32 %v2010_v59 }
 0x745   : > { %v2013_v49 = vpop.xlane.xlu1 %2012  ;;  %v2023_v62 = vmul.f32 %v3795_v60, %v3779_v27  ;;  %v2211_v27 = vsel %vm2129_vm6, %v1594_v17, 0  ;;  %v3844_v60 = vld [vmem:[#allocation2 + $0x20] sm:$0xff] }
 0x746   : > { %v3797_v63 = vpop.eup %3796  ;;  %3806 = vrcp.f32 %v2013_v49 }
 0x747   : > { %v2030_v0 = vpack.c.bf16 %v2023_v62, %v2022_v61  ;;  %v2024_v2 = vmul.f32 %v3797_v63, %v3781_v24  ;;  %v3845_v62 = vld [vmem:[#allocation2 + $0x28] sm:$0xff] }
 0x748   : > { %v3799_v1 = vpop.eup %3798 }
 0x749   : > { %v2025_v3 = vmul.f32 %v3799_v1, %v3783_v40  ;;  %3581 = vmatprep.mubr.msk.bf16.mxu0 %vm1420_vm5, %v2030_v0  ;;  %v3846_v0 = vld [vmem:[#allocation2 + $0x30] sm:$0xff] }
 0x74a   : > { %v3801_v4 = vpop.eup %3800 }
 0x74b   : > { %v2031_v5 = vpack.c.bf16 %v2025_v3, %v2024_v2  ;;  %v2026_v8 = vmul.f32 %v3801_v4, %v3785_v36  ;;  %v3847_v3 = vld [vmem:[#allocation2 + $0x38] sm:$0xff] }
 0x74c   : > { %v3803_v7 = vpop.eup %3802 }
 0x74d   : > { %3582 = vmatmul.mubr.msk.bf16.vlgmr.msra.gmra.mrb[40].mxu0 %vm1420_vm5, %v2031_v5  ;;  %v2027_v9 = vmul.f32 %v3803_v7, %v3787_v38 }
 0x74e   : > { %v3805_v10 = vpop.eup %3804  ;;  %3590 = vmatpush3.bf16.msra.mxu0 %v2131_v6 }
 0x74f   : > { %v2032_v11 = vpack.c.bf16 %v2027_v9, %v2026_v8  ;;  %v2028_v14 = vmul.f32 %v3805_v10, %v3789_v42  ;;  %3662 = vmatprep.subr.msk.bf16.mxu0 %vm2129_vm6, %v1594_v17 }
 0x750   : > { %v3807_v12 = vpop.eup %3806 }
 0x751   : > { %3585 = vmatprep.mubr.msk.bf16.mxu0 %vm1420_vm5, %v2032_v11  ;;  %v2029_v16 = vmul.f32 %v3807_v12, %v3791_v19  ;;  %v3843_v19 = vld [vmem:[#allocation2 + $0x18] sm:$0xff] }
 0x753   : > { %v2033_v18 = vpack.c.bf16 %v2029_v16, %v2028_v14 }
 0x755   : > { %3586 = vmatmul.mubr.msk.bf16.gmra.mrb[44].mxu0 %vm1420_vm5, %v2033_v18 }
 0x820   : > { %v3583_v39 = vpop.f32.mrb[40].mxu0 }
 0x821   : > { %v2080_v44 = vpop.f32.mrb[41].mxu0 }
 0x822   : > { %v3584_v13 = vpop.f32.mrb[42].mxu0 }
 0x823   : > { %v2112_v22 = vpack.c.bf16 %v3584_v13, %v3583_v39  ;;  %v2083_v26 = vpop.f32.mrb[43].mxu0 }
 0x824   : > { %v2111_v15 = vpack.c.bf16 %v2083_v26, %v2080_v44 }
 0x826   : > { %3591 = vmatprep.mubr.msk.bf16.mxu0 %vm1330_vm4, %v2111_v15 }
 0x827   : > { %3592 = vmatmul.mubr.msk.bf16.vlgmr.msra.gmra.mrb[48].mxu0 %vm1330_vm4, %v2112_v22 }
 0x828   : > { %3600 = vmatpush3.bf16.msra.mxu0 %v2211_v27  ;;  %v3587_v20 = vpop.f32.mrb[44].mxu0 }
 0x829   : > { %v2096_v30 = vpop.f32.mrb[45].mxu0 }
 0x82a   : > { %v3588_v24 = vpop.f32.mrb[46].mxu0 }
 0x82b   : > { %v2114_v31 = vpack.c.bf16 %v3588_v24, %v3587_v20  ;;  %v2099_v40 = vpop.f32.mrb[47].mxu0 }
 0x82c   : > { %v2113_v34 = vpack.c.bf16 %v2099_v40, %v2096_v30 }
 0x82e   : > { %3595 = vmatprep.mubr.msk.bf16.mxu0 %vm1330_vm4, %v2113_v34 }
 0x82f   : > { %3596 = vmatmul.mubr.msk.bf16.gmra.mrb[52].mxu0 %vm1330_vm4, %v2114_v31 }
 0x830   : > { %3601 = vmatprep.mubr.msk.bf16.mxu0 %vm1330_vm4, %v1590_v50 }
 0x837   : > { %3602 = vmatmul.mubr.msk.bf16.vlgmr.msra.gmra.mrb[48].mxu0 %vm1330_vm4, %v1591_v47 }
 0x838   : > { %3605 = vmatprep.mubr.msk.bf16.mxu0 %vm1330_vm4, %v1592_v55 }
 0x83f   : > { %3606 = vmatmul.mubr.msk.bf16.gmra.mrb[52].mxu0 %vm1330_vm4, %v1593_v53  ;;  %v3842_v53 = vld [vmem:[#allocation2 + $0x10] sm:$0xff] }
 0x90a   : > { %v3603_v48 = vpop.f32.mrb[48].mxu0 }
 0x90b   : > { %v2247_v50 = vpop.f32.mrb[49].mxu0  ;;  %v2287_v32 = vadd.f32 %v3603_v48, %v3331_v33 }
 0x90c   : > { %v2285_v37 = vadd.f32 %v3331_v33, %v2247_v50  ;;  %v3604_v47 = vpop.f32.mrb[50].mxu0 }
 0x90d   : > { %v2250_v36 = vpop.f32.mrb[51].mxu0  ;;  %v2288_v21 = vadd.f32 %v3604_v47, %v3331_v33  ;;  %v2295_v41 = vadd.f32 %v3842_v53, %v2287_v32 }
 0x90e   : > { %v2286_v35 = vadd.f32 %v3331_v33, %v2250_v36  ;;  %v2293_v55 = vadd.f32 %v3840_v54, %v2285_v37 }
 0x90f   : > { %v2296_v25 = vadd.f32 %v3843_v19, %v2288_v21  ;;  %v2309_v29 = vsel %vm1080_vm3, %v2295_v41, 0.0  ;;  %v4568_v19 = vld [vmem:[%s933_s29] sm:$0xff]   ;;  %s4894_s29 = scalar_lea.vmem %s4810_s11, %s4138_s2 }
 0x910   : > { %v2303_v38 = vsel %vm1080_vm3, %v2293_v55, 0.0  ;;  %v2294_v52 = vadd.f32 %v3841_v51, %v2286_v35 }
 0x911   : > { %2304 = vadd.xlane.f32.xlu0 %v2303_v38  ;;  %v2312_v59 = vsel %vm1080_vm3, %v2296_v25, 0.0 }
 0x912   : > { %v3607_v42 = vpop.f32.mrb[52].mxu0  ;;  %v2306_v43 = vsel %vm1080_vm3, %v2294_v52, 0.0 }
 0x913   : > { %2307 = vadd.xlane.f32.xlu1 %v2306_v43  ;;  %v2263_v45 = vpop.f32.mrb[53].mxu0  ;;  %v2291_v23 = vadd.f32 %v3607_v42, %v3331_v33  ;;  %v3742_v43 = vld [vmem:[%s925_s24] sm:$0xff]  }
 0x914   : > { %v2289_v28 = vadd.f32 %v3331_v33, %v2263_v45  ;;  %v3608_v46 = vpop.f32.mrb[54].mxu0  ;;  %3609 = vmatprep.subr.bf16.mxu1 %v3742_v43 }
 0x915   : > { %2310 = vadd.xlane.f32.xlu0 %v2309_v29  ;;  %v2266_v56 = vpop.f32.mrb[55].mxu0  ;;  %v2292_v57 = vadd.f32 %v3608_v46, %v3331_v33  ;;  %v2299_v1 = vadd.f32 %v3846_v0, %v2291_v23  ;;  %3610 = vmatpush3.bf16.msra.mxu1 %v3742_v43  ;;  %v3334_v43 = vld [vmem:[%s928_s6] ss:$0 sm:$0xff] }
 0x916   : > { %v2290_v58 = vadd.f32 %v3331_v33, %v2266_v56  ;;  %v2297_v49 = vadd.f32 %v3844_v60, %v2289_v28  ;;  %3619 = vmatprep.subr.bf16.mxu1 %v4568_v19 }
 0x917   : > { %2313 = vadd.xlane.f32.xlu1 %v2312_v59  ;;  %v2300_v4 = vadd.f32 %v3847_v3, %v2292_v57  ;;  %v2321_v5 = vsel %vm1080_vm3, %v2299_v1, 0.0 }
 0x918   : > { %v2315_v61 = vsel %vm1080_vm3, %v2297_v49, 0.0  ;;  %v2298_v63 = vadd.f32 %v3845_v62, %v2290_v58 }
 0x919   : > { %2316 = vadd.xlane.f32.xlu0 %v2315_v61  ;;  %v2324_v6 = vsel %vm1080_vm3, %v2300_v4, 0.0 }
 0x91a   : > { %v2318_v2 = vsel %vm1080_vm3, %v2298_v63, 0.0 }
 0x91b   : > { %2319 = vadd.xlane.f32.xlu1 %v2318_v2 }
 0x91d   : > { %2322 = vadd.xlane.f32.xlu0 %v2321_v5 }
 0x91f   : > { %2325 = vadd.xlane.f32.xlu1 %v2324_v6 }
 0x99e   : > { %v2305_v7 = vpop.xlane.xlu0 %2304 }
 0x99f   : > { %v2328_v8 = vmul.f32 0.0625, %v2305_v7  ;;  %v3332_v7 = vld [vmem:[%s4894_s29] ss:$0 sm:$0xff] }
 0x9a0   : > { %v2308_v9 = vpop.xlane.xlu1 %2307 }
 0x9a1   : > { %v4518_v10 = vsub.f32 %v2293_v55, %v2328_v8  ;;  %v2329_v11 = vmul.f32 0.0625, %v2308_v9 }
 0x9a2   : > { %v2311_v12 = vpop.xlane.xlu0 %2310 }
 0x9a3   : > { %v4520_v14 = vsub.f32 %v2294_v52, %v2329_v11  ;;  %v2330_v16 = vmul.f32 0.0625, %v2311_v12  ;;  %v2344_v18 = vmul.f32 %v4518_v10, %v4518_v10 }
 0x9a4   : > { %v2314_v17 = vpop.xlane.xlu1 %2313 }
 0x9a5   : > { %v4524_v39 = vsub.f32 %v2295_v41, %v2330_v16  ;;  %v2331_v44 = vmul.f32 0.0625, %v2314_v17  ;;  %v2352_v13 = vsel %vm1080_vm3, %v2344_v18, 0.0  ;;  %v2345_v22 = vmul.f32 %v4520_v14, %v4520_v14 }
 0x9a6   : > { %2353 = vadd.xlane.f32.xlu0 %v2352_v13  ;;  %v2317_v26 = vpop.xlane.xlu0 %2316  ;;  %v3333_v13 = vld [vmem:[%s4895_s20] ss:$0 sm:$0xff] }
 0x9a7   : > { %v4529_v15 = vsub.f32 %v2296_v25, %v2331_v44  ;;  %v2332_v27 = vmul.f32 0.0625, %v2317_v26  ;;  %v2355_v20 = vsel %vm1080_vm3, %v2345_v22, 0.0  ;;  %v2346_v30 = vmul.f32 %v4524_v39, %v4524_v39 }
 0x9a8   : > { %2356 = vadd.xlane.f32.xlu1 %v2355_v20  ;;  %v2320_v24 = vpop.xlane.xlu1 %2319 }
 0x9a9   : > { %v4534_v31 = vsub.f32 %v2297_v49, %v2332_v27  ;;  %v2333_v40 = vmul.f32 0.0625, %v2320_v24  ;;  %v2358_v34 = vsel %vm1080_vm3, %v2346_v30, 0.0  ;;  %v2347_v33 = vmul.f32 %v4529_v15, %v4529_v15 }
 0x9aa   : > { %2359 = vadd.xlane.f32.xlu0 %v2358_v34  ;;  %v2323_v48 = vpop.xlane.xlu0 %2322 }
 0x9ab   : > { %v4539_v50 = vsub.f32 %v2298_v63, %v2333_v40  ;;  %v2334_v32 = vmul.f32 0.0625, %v2323_v48  ;;  %v2361_v37 = vsel %vm1080_vm3, %v2347_v33, 0.0  ;;  %v2348_v47 = vmul.f32 %v4534_v31, %v4534_v31 }
 0x9ac   : > { %2362 = vadd.xlane.f32.xlu1 %v2361_v37  ;;  %v2326_v36 = vpop.xlane.xlu1 %2325 }
 0x9ad   : > { %v4544_v21 = vsub.f32 %v2299_v1, %v2334_v32  ;;  %v2335_v35 = vmul.f32 0.0625, %v2326_v36  ;;  %v2364_v54 = vsel %vm1080_vm3, %v2348_v47, 0.0  ;;  %v2349_v55 = vmul.f32 %v4539_v50, %v4539_v50 }
 0x9ae   : > { %2365 = vadd.xlane.f32.xlu0 %v2364_v54 }
 0x9af   : > { %v4549_v38 = vsub.f32 %v2300_v4, %v2335_v35  ;;  %v2367_v51 = vsel %vm1080_vm3, %v2349_v55, 0.0  ;;  %v2350_v52 = vmul.f32 %v4544_v21, %v4544_v21 }
 0x9b0   : > { %2368 = vadd.xlane.f32.xlu1 %v2367_v51 }
 0x9b1   : > { %v2370_v53 = vsel %vm1080_vm3, %v2350_v52, 0.0  ;;  %v2351_v41 = vmul.f32 %v4549_v38, %v4549_v38 }
 0x9b2   : > { %2371 = vadd.xlane.f32.xlu0 %v2370_v53 }
 0x9b3   : > { %v2373_v42 = vsel %vm1080_vm3, %v2351_v41, 0.0 }
 0x9b4   : > { %2374 = vadd.xlane.f32.xlu1 %v2373_v42 }
 0xa33   : > { %v2354_v25 = vpop.xlane.xlu0 %2353 }
 0xa34   : > { %v2376_v45 = vmul.f32 0.0625, %v2354_v25 }
 0xa35   : > { %v2357_v23 = vpop.xlane.xlu1 %2356 }
 0xa36   : > { %v2384_v28 = vadd.f32 1e-05, %v2376_v45  ;;  %v2377_v46 = vmul.f32 0.0625, %v2357_v23 }
 0xa37   : > { %v2360_v29 = vpop.xlane.xlu0 %2359 }
 0xa38   : > { %3808 = vrsqrt.f32 %v2384_v28  ;;  %v2385_v56 = vadd.f32 1e-05, %v2377_v46  ;;  %v2378_v57 = vmul.f32 0.0625, %v2360_v29 }
 0xa39   : > { %v2363_v58 = vpop.xlane.xlu1 %2362 }
 0xa3a   : > { %3810 = vrsqrt.f32 %v2385_v56  ;;  %v2386_v59 = vadd.f32 1e-05, %v2378_v57  ;;  %v2379_v60 = vmul.f32 0.0625, %v2363_v58 }
 0xa3b   : > { %v2366_v49 = vpop.xlane.xlu0 %2365 }
 0xa3c   : > { %3812 = vrsqrt.f32 %v2386_v59  ;;  %v2387_v61 = vadd.f32 1e-05, %v2379_v60  ;;  %v2380_v62 = vmul.f32 0.0625, %v2366_v49 }
 0xa3d   : > { %v2369_v63 = vpop.xlane.xlu1 %2368 }
 0xa3e   : > { %3814 = vrsqrt.f32 %v2387_v61  ;;  %v2388_v0 = vadd.f32 1e-05, %v2380_v62  ;;  %v2381_v1 = vmul.f32 0.0625, %v2369_v63 }
 0xa3f   : > { %v2372_v2 = vpop.xlane.xlu0 %2371 }
 0xa40   : > { %3816 = vrsqrt.f32 %v2388_v0  ;;  %v2389_v3 = vadd.f32 1e-05, %v2381_v1  ;;  %v2382_v4 = vmul.f32 0.0625, %v2372_v2 }
 0xa41   : > { %v2375_v5 = vpop.xlane.xlu1 %2374 }
 0xa42   : > { %v3809_v6 = vpop.eup %3808  ;;  %3818 = vrsqrt.f32 %v2389_v3  ;;  %v2390_v8 = vadd.f32 1e-05, %v2382_v4  ;;  %v2383_v9 = vmul.f32 0.0625, %v2375_v5 }
 0xa43   : > { %v2400_v11 = vmul.f32 %v3809_v6, %v4518_v10 }
 0xa44   : > { %v3811_v12 = vpop.eup %3810  ;;  %3820 = vrsqrt.f32 %v2390_v8  ;;  %v2391_v16 = vadd.f32 1e-05, %v2383_v9 }
 0xa45   : > { %v2401_v18 = vmul.f32 %v3811_v12, %v4520_v14  ;;  %v2414_v17 = vmul.f32 %v3332_v7, %v2400_v11 }
 0xa46   : > { %v3813_v44 = vpop.eup %3812  ;;  %3822 = vrsqrt.f32 %v2391_v16  ;;  %v3340_v16 = vld [vmem:[%s936_s23] ss:$0 sm:$0xff] }
 0xa47   : > { %v2402_v22 = vmul.f32 %v3813_v44, %v4524_v39  ;;  %v2415_v26 = vmul.f32 %v3332_v7, %v2401_v18  ;;  %v4585_v30 = vadd.f32 %v3333_v13, %v2414_v17 }
 0xa48   : > { %v3815_v27 = vpop.eup %3814 }
 0xa49   : > { %v2416_v20 = vmul.f32 %v3332_v7, %v2402_v22  ;;  %v2403_v10 = vmul.f32 %v3815_v27, %v4529_v15  ;;  %v4587_v24 = vadd.f32 %v3333_v13, %v2415_v26 }
 0xa4a   : > { %v3817_v14 = vpop.eup %3816 }
 0xa4b   : > { %v2417_v40 = vmul.f32 %v3332_v7, %v2403_v10  ;;  %v2404_v34 = vmul.f32 %v3817_v14, %v4534_v31  ;;  %v2436_v33 = vpack.c.bf16 %v4587_v24, %v4585_v30  ;;  %v4592_v32 = vadd.f32 %v3333_v13, %v2416_v20 }
 0xa4c   : > { %v3819_v48 = vpop.eup %3818 }
 0xa4d   : > { %v4594_v39 = vadd.f32 %v3333_v13, %v2417_v40  ;;  %v2405_v37 = vmul.f32 %v3819_v48, %v4539_v50  ;;  %3611 = vmatprep.mubr.msk.bf16.mxu1 %vm1080_vm3, %v2436_v33  ;;  %v2418_v15 = vmul.f32 %v3332_v7, %v2404_v34 }
 0xa4e   : > { %v3821_v47 = vpop.eup %3820 }
 0xa4f   : > { %v2406_v36 = vmul.f32 %v3821_v47, %v4544_v21  ;;  %v2437_v35 = vpack.c.bf16 %v4594_v39, %v4592_v32  ;;  %v2419_v31 = vmul.f32 %v3332_v7, %v2405_v37  ;;  %v4603_v51 = vadd.f32 %v3333_v13, %v2418_v15 }
 0xa50   : > { %v3823_v54 = vpop.eup %3822 }
 0xa51   : > { %v2407_v55 = vmul.f32 %v3823_v54, %v4549_v38  ;;  %3612 = vmatmul.mubr.msk.bf16.vlgmr.msra.gmra.mrb[32].mxu1 %vm1080_vm3, %v2437_v35  ;;  %v4605_v52 = vadd.f32 %v3333_v13, %v2419_v31  ;;  %v2420_v50 = vmul.f32 %v3332_v7, %v2406_v36 }
 0xa52   : > { %3620 = vmatpush3.bf16.msra.mxu1 %v4568_v19 }
 0xa53   : > { %v2438_v21 = vpack.c.bf16 %v4605_v52, %v4603_v51  ;;  %v2421_v53 = vmul.f32 %v3332_v7, %v2407_v55  ;;  %v4611_v41 = vadd.f32 %v3333_v13, %v2420_v50 }
 0xa55   : > { %3615 = vmatprep.mubr.msk.bf16.mxu1 %vm1080_vm3, %v2438_v21  ;;  %v4613_v42 = vadd.f32 %v3333_v13, %v2421_v53 }
 0xa57   : > { %v2439_v38 = vpack.c.bf16 %v4613_v42, %v4611_v41 }
 0xa59   : > { %3616 = vmatmul.mubr.msk.bf16.gmra.mrb[36].mxu1 %vm1080_vm3, %v2439_v38 }
 0xb24   : > { %v3613_v19 = vpop.f32.mrb[32].mxu1 }
 0xb25   : > { %v2510_v25 = vadd.f32 %v3613_v19, %v3334_v43  ;;  %v2501_v45 = vpop.f32.mrb[33].mxu1 }
 0xb26   : > { %v2502_v23 = vadd.f32 %v3334_v43, %v2501_v45  ;;  %v3614_v28 = vpop.f32.mrb[34].mxu1 }
 0xb27   : > { %v2513_v46 = vadd.f32 %v3614_v28, %v3334_v43  ;;  %v2504_v29 = vpop.f32.mrb[35].mxu1  ;;  %v2534_v57 = vmax.f32 %v2510_v25, 0.0 }
 0xb28   : > { %v2505_v56 = vadd.f32 %v3334_v43, %v2504_v29  ;;  %v2532_v59 = vmax.f32 %v2502_v23, 0.0 }
 0xb29   : > { %v2535_v58 = vmax.f32 %v2513_v46, 0.0 }
 0xb2a   : > { %v2533_v60 = vmax.f32 %v2505_v56, 0.0 }
 0xb2b   : > { %v2541_v49 = vpack.c.bf16 %v2535_v58, %v2534_v57 }
 0xb2c   : > { %v2540_v61 = vpack.c.bf16 %v2533_v60, %v2532_v59  ;;  %v3617_v62 = vpop.f32.mrb[36].mxu1 }
 0xb2d   : > { %v2526_v63 = vadd.f32 %v3617_v62, %v3334_v43  ;;  %v2517_v0 = vpop.f32.mrb[37].mxu1 }
 0xb2e   : > { %v2518_v1 = vadd.f32 %v3334_v43, %v2517_v0  ;;  %v3618_v2 = vpop.f32.mrb[38].mxu1  ;;  %3621 = vmatprep.mubr.msk.bf16.mxu1 %vm1080_vm3, %v2540_v61 }
 0xb2f   : > { %v2529_v3 = vadd.f32 %v3618_v2, %v3334_v43  ;;  %v2520_v4 = vpop.f32.mrb[39].mxu1  ;;  %3622 = vmatmul.mubr.msk.bf16.vlgmr.msra.gmra.mrb[40].mxu1 %vm1080_vm3, %v2541_v49  ;;  %v2538_v6 = vmax.f32 %v2526_v63, 0.0 }
 0xb30   : > { %v2521_v5 = vadd.f32 %v3334_v43, %v2520_v4  ;;  %v2536_v8 = vmax.f32 %v2518_v1, 0.0 }
 0xb31   : > { %v2539_v7 = vmax.f32 %v2529_v3, 0.0 }
 0xb32   : > { %v2537_v9 = vmax.f32 %v2521_v5, 0.0 }
 0xb33   : > { %v2543_v11 = vpack.c.bf16 %v2539_v7, %v2538_v6 }
 0xb34   : > { %v2542_v12 = vpack.c.bf16 %v2537_v9, %v2536_v8 }
 0xb36   : > { %3625 = vmatprep.mubr.msk.bf16.mxu1 %vm1080_vm3, %v2542_v12 }
 0xb37   : > { %3626 = vmatmul.mubr.msk.bf16.gmra.mrb[44].mxu1 %vm1080_vm3, %v2543_v11 }
 0xc02   : > { %v3623_v18 = vpop.f32.mrb[40].mxu1 }
 0xc03   : > { %v2614_v17 = vadd.f32 %v3623_v18, %v3340_v16  ;;  %v2605_v44 = vpop.f32.mrb[41].mxu1 }
 0xc04   : > { %v2606_v13 = vadd.f32 %v3340_v16, %v2605_v44  ;;  %v3624_v22 = vpop.f32.mrb[42].mxu1 }
 0xc05   : > { %v2617_v26 = vadd.f32 %v3624_v22, %v3340_v16  ;;  %v2608_v27 = vpop.f32.mrb[43].mxu1  ;;  %v2638_v20 = vadd.f32 %v2614_v17, %v4592_v32 }
 0xc06   : > { %v2609_v10 = vadd.f32 %v3340_v16, %v2608_v27  ;;  %v2636_v34 = vadd.f32 %v2606_v13, %v4585_v30 }
 0xc07   : > { %v2652_v14 = vsel %vm1080_vm3, %v2638_v20, 0.0  ;;  %v2639_v40 = vadd.f32 %v2617_v26, %v4594_v39 }
 0xc08   : > { %2653 = vadd.xlane.f32.xlu0 %v2652_v14  ;;  %v2637_v48 = vadd.f32 %v2609_v10, %v4587_v24  ;;  %v2646_v47 = vsel %vm1080_vm3, %v2636_v34, 0.0 }
 0xc09   : > { %v2655_v33 = vsel %vm1080_vm3, %v2639_v40, 0.0 }
 0xc0a   : > { %2656 = vadd.xlane.f32.xlu1 %v2655_v33  ;;  %v3627_v37 = vpop.f32.mrb[44].mxu1  ;;  %v2649_v54 = vsel %vm1080_vm3, %v2637_v48, 0.0 }
 0xc0b   : > { %v2621_v15 = vpop.f32.mrb[45].mxu1  ;;  %v2630_v36 = vadd.f32 %v3627_v37, %v3340_v16 }
 0xc0c   : > { %v2622_v35 = vadd.f32 %v3340_v16, %v2621_v15  ;;  %2647 = vadd.xlane.f32.xlu0 %v2646_v47  ;;  %v3628_v32 = vpop.f32.mrb[46].mxu1 }
 0xc0d   : > { %v2624_v31 = vpop.f32.mrb[47].mxu1  ;;  %v2633_v39 = vadd.f32 %v3628_v32, %v3340_v16  ;;  %v2642_v21 = vadd.f32 %v2630_v36, %v4611_v41 }
 0xc0e   : > { %v2625_v55 = vadd.f32 %v3340_v16, %v2624_v31  ;;  %2650 = vadd.xlane.f32.xlu1 %v2649_v54  ;;  %v2640_v30 = vadd.f32 %v2622_v35, %v4603_v51 }
 0xc0f   : > { %v2643_v38 = vadd.f32 %v2633_v39, %v4613_v42  ;;  %v2664_v43 = vsel %vm1080_vm3, %v2642_v21, 0.0 }
 0xc10   : > { %v2658_v50 = vsel %vm1080_vm3, %v2640_v30, 0.0  ;;  %v2641_v24 = vadd.f32 %v2625_v55, %v4605_v52 }
 0xc11   : > { %2659 = vadd.xlane.f32.xlu0 %v2658_v50  ;;  %v2667_v19 = vsel %vm1080_vm3, %v2643_v38, 0.0 }
 0xc12   : > { %v2661_v53 = vsel %vm1080_vm3, %v2641_v24, 0.0 }
 0xc13   : > { %2662 = vadd.xlane.f32.xlu1 %v2661_v53 }
 0xc15   : > { %2665 = vadd.xlane.f32.xlu0 %v2664_v43 }
 0xc17   : > { %2668 = vadd.xlane.f32.xlu1 %v2667_v19 }
 0xc95   : > { %v2654_v25 = vpop.xlane.xlu0 %2653 }
 0xc96   : > { %v2672_v51 = vmul.f32 0.0625, %v2654_v25 }
 0xc97   : > { %v2657_v45 = vpop.xlane.xlu1 %2656 }
 0xc98   : > { %v4648_v23 = vsub.f32 %v2638_v20, %v2672_v51  ;;  %v2673_v52 = vmul.f32 0.0625, %v2657_v45 }
 0xc99   : > { %v2648_v28 = vpop.xlane.xlu0 %2647 }
 0xc9a   : > { %v4650_v41 = vsub.f32 %v2639_v40, %v2673_v52  ;;  %v2670_v46 = vmul.f32 0.0625, %v2648_v28  ;;  %v2688_v42 = vmul.f32 %v4648_v23, %v4648_v23  ;;  %v3347_v52 = vld [vmem:[%s920_s9] ss:$0 sm:$0xff]  ;;  %s4899_s9 = sld [smem:[#allocation8_spill]] }
 0xc9b   : > { %v2651_v29 = vpop.xlane.xlu1 %2650 }
 0xc9c   : > { %v4654_v56 = vsub.f32 %v2636_v34, %v2670_v46  ;;  %v2671_v57 = vmul.f32 0.0625, %v2651_v29  ;;  %v2700_v58 = vsel %vm1080_vm3, %v2688_v42, 0.0  ;;  %v2689_v59 = vmul.f32 %v4650_v41, %v4650_v41 }
 0xc9d   : > { %2701 = vadd.xlane.f32.xlu0 %v2700_v58 }
 0xc9e   : > { %v4659_v60 = vsub.f32 %v2637_v48, %v2671_v57  ;;  %v2660_v49 = vpop.xlane.xlu0 %2659  ;;  %v2703_v61 = vsel %vm1080_vm3, %v2689_v59, 0.0  ;;  %v2686_v62 = vmul.f32 %v4654_v56, %v4654_v56 }
 0xc9f   : > { %v2674_v63 = vmul.f32 0.0625, %v2660_v49  ;;  %2704 = vadd.xlane.f32.xlu1 %v2703_v61 }
 0xca0   : > { %v2663_v0 = vpop.xlane.xlu1 %2662  ;;  %v2694_v1 = vsel %vm1080_vm3, %v2686_v62, 0.0  ;;  %v2687_v2 = vmul.f32 %v4659_v60, %v4659_v60  ;;  %p3348_p1 = scmp.ne.s32.totalorder %s4899_s9, 1 }
 0xca1   : > { %v4667_v3 = vsub.f32 %v2640_v30, %v2674_v63  ;;  %v2675_v4 = vmul.f32 0.0625, %v2663_v0  ;;  %2695 = vadd.xlane.f32.xlu0 %v2694_v1  ;;  %s4900_s28 = sld [smem:[#allocation35_spill]] (!%p3348_p1)  ;;  %vm3953_vm7 = vmmov (!%p3348_p1), 0   ;;  %vm2858_vm8 = vcmask (!%p3348_p1), 130112   ;;  %s4902_s6 = sld [smem:[#allocation36_spill]] (!%p3348_p1) }
 0xca2   : > { %v2666_v5 = vpop.xlane.xlu0 %2665  ;;  %v2697_v6 = vsel %vm1080_vm3, %v2687_v2, 0.0  ;;  %vm2865_vm9 = vcmask (!%p3348_p1), 195712   ;;  %vm2872_vm10 = vcmask (!%p3348_p1), 261312   ;;  %vm2879_vm11 = vcmask (!%p3348_p1), 326912  }
 0xca3   : > { %v4670_v7 = vsub.f32 %v2641_v24, %v2675_v4  ;;  %v2676_v8 = vmul.f32 0.0625, %v2666_v5  ;;  %2698 = vadd.xlane.f32.xlu1 %v2697_v6  ;;  %v2690_v9 = vmul.f32 %v4667_v3, %v4667_v3  ;;  %vm2886_vm12 = vcmask (!%p3348_p1), 392512  }
 0xca4   : > { %v2669_v11 = vpop.xlane.xlu1 %2668  ;;  %vm2893_vm13 = vcmask (!%p3348_p1), 458112   ;;  %vm2900_vm14 = vcmask (!%p3348_p1), 523712   ;;  %vm2970_vm15 = vcmask (!%p3348_p1), 24576  }
 0xca5   : > { %v4674_v12 = vsub.f32 %v2642_v21, %v2676_v8  ;;  %v2677_v16 = vmul.f32 0.0625, %v2669_v11  ;;  %v2706_v18 = vsel %vm1080_vm3, %v2690_v9, 0.0  ;;  %v2691_v17 = vmul.f32 %v4670_v7, %v4670_v7 }
 0xca6   : > { %2707 = vadd.xlane.f32.xlu0 %v2706_v18 }
 0xca7   : > { %v4679_v44 = vsub.f32 %v2643_v38, %v2677_v16  ;;  %v2709_v13 = vsel %vm1080_vm3, %v2691_v17, 0.0  ;;  %v2692_v22 = vmul.f32 %v4674_v12, %v4674_v12  ;;  %v3346_v38 = vld [vmem:[%s4898_s3] ss:$0 sm:$0xff]  ;;  %s4901_s30 = smov (!%p3348_p1), %s4900_s28 }
 0xca8   : > { %2710 = vadd.xlane.f32.xlu1 %v2709_v13 }
 0xca9   : > { %v2712_v26 = vsel %vm1080_vm3, %v2692_v22, 0.0  ;;  %v2693_v27 = vmul.f32 %v4679_v44, %v4679_v44 }
 0xcaa   : > { %2713 = vadd.xlane.f32.xlu0 %v2712_v26 }
 0xcab   : > { %v2715_v20 = vsel %vm1080_vm3, %v2693_v27, 0.0 }
 0xcac   : > { %2716 = vadd.xlane.f32.xlu1 %v2715_v20 }
 0xd2a   : > { %v2702_v10 = vpop.xlane.xlu0 %2701 }
 0xd2b   : > { %v2720_v14 = vmul.f32 0.0625, %v2702_v10 }
 0xd2c   : > { %v2705_v40 = vpop.xlane.xlu1 %2704 }
 0xd2d   : > { %v2728_v34 = vadd.f32 1e-05, %v2720_v14  ;;  %v2721_v33 = vmul.f32 0.0625, %v2705_v40  ;;  %v3848_v40 = vld [vmem:[%s4900_s28] sm:$0xff] (!%p3348_p1)  }
 0xd2e   : > { %v2696_v48 = vpop.xlane.xlu0 %2695 }
 0xd2f   : > { %3824 = vrsqrt.f32 %v2728_v34  ;;  %v2729_v37 = vadd.f32 1e-05, %v2721_v33  ;;  %v2718_v15 = vmul.f32 0.0625, %v2696_v48  ;;  %v3952_v34 = vmov (!%p3348_p1), 0.0   ;;  %v3849_v33 = vld [vmem:[%s4901_s30 + $0x8] sm:$0xff] (!%p3348_p1)   ;;  %v3850_v48 = vld [vmem:[%s4901_s30 + $0x10] sm:$0xff] (!%p3348_p1)  }
 0xd30   : > { %v2699_v47 = vpop.xlane.xlu1 %2698  ;;  %3629 = vmatprep.subr.bf16.mxu0 (!%p3348_p1), %v3952_v34  ;;  %3637 = vmatprep.mubr.msk.bf16.mxu0 (!%p3348_p1), %vm3953_vm7, %v3952_v34 }
 0xd31   : > { %3826 = vrsqrt.f32 %v2729_v37  ;;  %v2726_v36 = vadd.f32 1e-05, %v2718_v15  ;;  %v2719_v35 = vmul.f32 0.0625, %v2699_v47  ;;  %3630 = vmatpush3.bf16.msra.mxu0 (!%p3348_p1), %v3848_v40  ;;  %v3851_v37 = vld [vmem:[%s4901_s30 + $0x18] sm:$0xff] (!%p3348_p1)   ;;  %v2847_v15 = vlaneseq (!%p3348_p1) }
 0xd32   : > { %3631 = vmatprep.subr.bf16.mxu0 (!%p3348_p1), %v3952_v34 }
 0xd33   : > { %3828 = vrsqrt.f32 %v2726_v36  ;;  %v2727_v32 = vadd.f32 1e-05, %v2719_v35  ;;  %v2708_v31 = vpop.xlane.xlu0 %2707  ;;  %v2848_v47 = vand.u32 (!%p3348_p1), 127, %v2847_v15 }
 0xd34   : > { %v2722_v54 = vmul.f32 0.0625, %v2708_v31 }
 0xd35   : > { %3830 = vrsqrt.f32 %v2727_v32  ;;  %v2711_v39 = vpop.xlane.xlu1 %2710  ;;  %3632 = vmatpush3.bf16.msra.mxu0 (!%p3348_p1), %v3849_v33  ;;  %v2850_v32 = vshrl.u32 (!%p3348_p1), %v2847_v15, 7  ;;  %v2860_v31 = vadd.s32 (!%p3348_p1), 4294967280, %v2848_v47 }
 0xd36   : > { %v2730_v55 = vadd.f32 1e-05, %v2722_v54  ;;  %v2723_v30 = vmul.f32 0.0625, %v2711_v39  ;;  %3633 = vmatprep.subr.bf16.mxu0 (!%p3348_p1), %v3952_v34  ;;  %v2853_v54 = vadd.s32 (!%p3348_p1), 4294967288, %v2848_v47  ;;  %v2867_v39 = vadd.s32 (!%p3348_p1), 4294967272, %v2848_v47 }
 0xd37   : > { %v2714_v50 = vpop.xlane.xlu0 %2713 }
 0xd38   : > { %3832 = vrsqrt.f32 %v2730_v55  ;;  %v2731_v24 = vadd.f32 1e-05, %v2723_v30  ;;  %v2724_v21 = vmul.f32 0.0625, %v2714_v50 }
 0xd39   : > { %v3825_v53 = vpop.eup %3824  ;;  %v2717_v43 = vpop.xlane.xlu1 %2716  ;;  %3634 = vmatpush3.bf16.msra.mxu0 (!%p3348_p1), %v3850_v48  ;;  %v2834_v48 = vld [vmem:[%s4902_s6] sm:$0x1] (!%p3348_p1) }
 0xd3a   : > { %v2744_v19 = vmul.f32 %v3825_v53, %v4648_v23  ;;  %3834 = vrsqrt.f32 %v2731_v24  ;;  %v2732_v25 = vadd.f32 1e-05, %v2724_v21  ;;  %v2725_v51 = vmul.f32 0.0625, %v2717_v43  ;;  %3635 = vmatprep.subr.bf16.mxu0 (!%p3348_p1), %v3952_v34 }
 0xd3b   : > { %v3827_v45 = vpop.eup %3826 }
 0xd3c   : > { %v2758_v28 = vmul.f32 %v3346_v38, %v2744_v19  ;;  %v2745_v46 = vmul.f32 %v3827_v45, %v4650_v41  ;;  %3836 = vrsqrt.f32 %v2732_v25  ;;  %v2733_v42 = vadd.f32 1e-05, %v2725_v51 }
 0xd3d   : > { %v3829_v29 = vpop.eup %3828  ;;  %3636 = vmatpush3.bf16.msra.mxu0 (!%p3348_p1), %v3851_v37  ;;  %v2851_v19 = vsub.s32 (!%p3348_p1), %v2848_v47, %v2850_v32  ;;  %v2856_v25 = vsub.s32 (!%p3348_p1), %v2853_v54, %v2850_v32  ;;  %v2870_v45 = vsub.s32 (!%p3348_p1), %v2867_v39, %v2850_v32 }
 0xd3e   : > { %v2772_v57 = vadd.f32 %v3347_v52, %v2758_v28  ;;  %v2759_v58 = vmul.f32 %v3346_v38, %v2745_v46  ;;  %v2742_v59 = vmul.f32 %v3829_v29, %v4654_v56  ;;  %3838 = vrsqrt.f32 %v2733_v42 }
 0xd3f   : > { %v3831_v23 = vpop.eup %3830  ;;  %v2874_v28 = vadd.s32 (!%p3348_p1), 4294967264, %v2848_v47  ;;  %v2881_v46 = vadd.s32 (!%p3348_p1), 4294967256, %v2848_v47 }
 0xd40   : > { %2780 = vst.msk [vmem:[#allocation2 + $0x10] sm:$0xff] %vm1080_vm3, %v2772_v57  ;;  %v2773_v49 = vadd.f32 %v3347_v52, %v2759_v58  ;;  %v2756_v61 = vmul.f32 %v3346_v38, %v2742_v59  ;;  %v2743_v62 = vmul.f32 %v3831_v23, %v4659_v60 }
 0xd42   : > { %v3833_v63 = vpop.eup %3832  ;;  %2781 = vst.msk [vmem:[#allocation2 + $0x18] sm:$0xff] %vm1080_vm3, %v2773_v49  ;;  %v2770_v0 = vadd.f32 %v3347_v52, %v2756_v61  ;;  %v2757_v41 = vmul.f32 %v3346_v38, %v2743_v62  ;;  %v2888_v61 = vadd.s32 (!%p3348_p1), 4294967248, %v2848_v47 }
 0xd43   : > { %v2746_v1 = vmul.f32 %v3833_v63, %v4667_v3 }
 0xd44   : > { %v3835_v2 = vpop.eup %3834  ;;  %2778 = vst.msk [vmem:[#allocation2] sm:$0xff] %vm1080_vm3, %v2770_v0  ;;  %v2771_v4 = vadd.f32 %v3347_v52, %v2757_v41  ;;  %v2790_v22 = vsel (!%p3348_p1), %vm1080_vm3, %v2770_v0, 0.0  ;;  %v2895_v41 = vadd.s32 (!%p3348_p1), 4294967240, %v2848_v47 }
 0xd45   : > { %v2760_v56 = vmul.f32 %v3346_v38, %v2746_v1  ;;  %v2747_v5 = vmul.f32 %v3835_v2, %v4670_v7  ;;  %2791 = vadd.xlane.f32.xlu0 (!%p3348_p1), %v2790_v22  ;;  %v2877_v1 = vsub.s32 (!%p3348_p1), %v2874_v28, %v2850_v32  ;;  %v2884_v2 = vsub.s32 (!%p3348_p1), %v2881_v46, %v2850_v32 }
 0xd46   : > { %v3837_v6 = vpop.eup %3836  ;;  %2779 = vst.msk [vmem:[#allocation2 + $0x8] sm:$0xff] %vm1080_vm3, %v2771_v4  ;;  %v2793_v26 = vsel (!%p3348_p1), %vm1080_vm3, %v2771_v4, 0.0 }
 0xd47   : > { %v2774_v8 = vadd.f32 %v3347_v52, %v2760_v56  ;;  %v2761_v9 = vmul.f32 %v3346_v38, %v2747_v5  ;;  %v2748_v60 = vmul.f32 %v3837_v6, %v4674_v12  ;;  %v2796_v12 = vsel (!%p3348_p1), %vm1080_vm3, %v2772_v57, 0.0 }
 0xd48   : > { %v3839_v11 = vpop.eup %3838  ;;  %2797 = vadd.xlane.f32.xlu1 (!%p3348_p1), %v2796_v12 }
 0xd49   : > { %2782 = vst.msk [vmem:[#allocation2 + $0x20] sm:$0xff] %vm1080_vm3, %v2774_v8  ;;  %v2775_v16 = vadd.f32 %v3347_v52, %v2761_v9  ;;  %v2762_v18 = vmul.f32 %v3346_v38, %v2748_v60  ;;  %v2749_v3 = vmul.f32 %v3839_v11, %v4679_v44  ;;  %2789 = sbr.rel (%p3348_p1) target bundleno = 4095 (0xfff), region = 112  ;;  %v2799_v44 = vsel (!%p3348_p1), %vm1080_vm3, %v2773_v49, 0.0  ;;  %2794 = vadd.xlane.f32.xlu0 (!%p3348_p1), %v2793_v26 }
 0xd4a   : > { %v2802_v20 = vsel (!%p3348_p1), %vm1080_vm3, %v2774_v8, 0.0 }
 0xd4b   : > { %2783 = vst.msk [vmem:[#allocation2 + $0x28] sm:$0xff] %vm1080_vm3, %v2775_v16  ;;  %v2776_v17 = vadd.f32 %v3347_v52, %v2762_v18  ;;  %v2763_v13 = vmul.f32 %v3346_v38, %v2749_v3  ;;  %v2805_v27 = vsel (!%p3348_p1), %vm1080_vm3, %v2775_v16, 0.0  ;;  %v2863_v38 = vsub.s32 (!%p3348_p1), %v2860_v31, %v2850_v32 }
 0xd4c   : > { %2800 = vadd.xlane.f32.xlu1 (!%p3348_p1), %v2799_v44  ;;  %v2891_v3 = vsub.s32 (!%p3348_p1), %v2888_v61, %v2850_v32 }
 0xd4d   : > { %2784 = vst.msk [vmem:[#allocation2 + $0x30] sm:$0xff] %vm1080_vm3, %v2776_v17  ;;  %v2777_v7 = vadd.f32 %v3347_v52, %v2763_v13  ;;  %2803 = vadd.xlane.f32.xlu0 (!%p3348_p1), %v2802_v20  ;;  %v2808_v14 = vsel (!%p3348_p1), %vm1080_vm3, %v2776_v17, 0.0  ;;  %v2898_v17 = vsub.s32 (!%p3348_p1), %v2895_v41, %v2850_v32 }
 0xd4f   : > { %2785 = vst.msk [vmem:[#allocation2 + $0x38] sm:$0xff] %vm1080_vm3, %v2777_v7  ;;  %v2811_v10 = vsel (!%p3348_p1), %vm1080_vm3, %v2777_v7, 0.0 }
 0xd50   : > { %2806 = vadd.xlane.f32.xlu1 %v2805_v27 }
 0xd51   : > { %2809 = vadd.xlane.f32.xlu0 %v2808_v14 }
 0xd54   : > { %2812 = vadd.xlane.f32.xlu1 %v2811_v10 }
 0xdd2   : > { %v2792_v35 = vpop.xlane.xlu0 %2791 }
 0xdd3   : > { %v2814_v24 = vmul.f32 0.0625, %v2792_v35 }
 0xdd5   : > { %v2798_v36 = vpop.xlane.xlu1 %2797 }
 0xdd6   : > { %v2795_v30 = vpop.xlane.xlu0 %2794  ;;  %v2816_v50 = vmul.f32 0.0625, %v2798_v36 }
 0xdd7   : > { %v2815_v53 = vmul.f32 0.0625, %v2795_v30 }
 0xdd9   : > { %v2801_v55 = vpop.xlane.xlu1 %2800  ;;  %v2822_v51 = vpack.c.bf16 %v2815_v53, %v2814_v24 }
 0xdda   : > { %v2817_v21 = vmul.f32 0.0625, %v2801_v55  ;;  %v2804_v42 = vpop.xlane.xlu0 %2803 }
 0xddb   : > { %v2839_v58 = vunpack.c.l.b16 %v2822_v51  ;;  %v2840_v59 = vunpack.c.h.b16 %v2822_v51  ;;  %v2818_v49 = vmul.f32 0.0625, %v2804_v42 }
 0xddc   : > { %v2823_v43 = vpack.c.bf16 %v2817_v21, %v2816_v50 }
 0xddd   : > { %v2807_v52 = vpop.xlane.xlu1 %2806  ;;  %v2852_v63 = vrot.slane %v2839_v58, %v2851_v19  ;;  %v2857_v0 = vrot.slane %v2840_v59, %v2856_v25 }
 0xdde   : > { %v2841_v29 = vunpack.c.l.b16 %v2823_v43  ;;  %v2842_v57 = vunpack.c.h.b16 %v2823_v43  ;;  %v2819_v23 = vmul.f32 0.0625, %v2807_v52  ;;  %v2810_v5 = vpop.xlane.xlu0 %2809 }
 0xddf   : > { %v2859_v8 = vsel %vm2858_vm8, %v2857_v0, %v2852_v63  ;;  %v2820_v60 = vmul.f32 0.0625, %v2810_v5 }
 0xde0   : > { %v2864_v62 = vrot.slane %v2841_v29, %v2863_v38  ;;  %v2824_v4 = vpack.c.bf16 %v2819_v23, %v2818_v49  ;;  %v2871_v6 = vrot.slane %v2842_v57, %v2870_v45 }
 0xde1   : > { %v2813_v56 = vpop.xlane.xlu1 %2812 }
 0xde2   : > { %v2821_v9 = vmul.f32 0.0625, %v2813_v56  ;;  %v2866_v11 = vsel %vm2865_vm9, %v2864_v62, %v2859_v8  ;;  %v2843_v16 = vunpack.c.l.b16 %v2824_v4  ;;  %v2844_v18 = vunpack.c.h.b16 %v2824_v4 }
 0xde3   : > { %v2873_v7 = vsel %vm2872_vm10, %v2871_v6, %v2866_v11 }
 0xde4   : > { %v2825_v13 = vpack.c.bf16 %v2821_v9, %v2820_v60  ;;  %v2878_v12 = vrot.slane %v2843_v16, %v2877_v1  ;;  %v2885_v22 = vrot.slane %v2844_v18, %v2884_v2 }
 0xde6   : > { %v2845_v44 = vunpack.c.l.b16 %v2825_v13  ;;  %v2846_v26 = vunpack.c.h.b16 %v2825_v13  ;;  %v2880_v27 = vsel %vm2879_vm11, %v2878_v12, %v2873_v7 }
 0xde7   : > { %v2887_v14 = vsel %vm2886_vm12, %v2885_v22, %v2880_v27 }
 0xde8   : > { %v2892_v20 = vrot.slane %v2845_v44, %v2891_v3  ;;  %v2899_v10 = vrot.slane %v2846_v26, %v2898_v17 }
 0xdea   : > { %v2894_v40 = vsel %vm2893_vm13, %v2892_v20, %v2887_v14 }
 0xdeb   : > { %v2901_v34 = vsel %vm2900_vm14, %v2899_v10, %v2894_v40 }
 0xdec   : > { %v2902_v33 = vpack.c.b16 %v2901_v34, %v2901_v34 }
 0xdee   : > { %3638 = vmatmul.mubr.msk.bf16.vlgmr.msra.gmra.mrb[0].mxu0 %vm1420_vm5, %v2902_v33 }
 0xec1   : > { %v2964_v37 = vpop.f32.mrb[0].mxu0 }
 0xec2   : > { %v2965_v15 = vadd.f32 %v2964_v37, %v2834_v48  ;;  %v3639_v47 = vpop.f32.mrb[1].mxu0 }
 0xec3   : > { %v2967_v36 = vpop.f32.mrb[2].mxu0 }
 0xec4   : > { %v3640_v35 = vpop.f32.mrb[3].mxu0  ;;  %v2971_v32 = vsel %vm2970_vm15, %v2965_v15, -inf }
 0xec5   : > { %2972 = vmax.xlane.f32.xlu0 %v2971_v32 }
 0xf52   : > { %v2973_v31 = vpop.xlane.xlu0 %2972 }
 0xf53   : > { %v2974_v54 = vsub.f32 %v2965_v15, %v2973_v31 }
 0xf55   : > { %v2975_v39 = vmul.f32 1.442695, %v2974_v54 }
 0xf57   : > { %3852 = vpow2.f32 %v2975_v39 }
 0xf61   : > { %v3853_v55 = vpop.eup %3852 }
 0xf62   : > { %v2977_v30 = vsel %vm2970_vm15, %v3853_v55, 0.0 }
 0xf63   : > { %2978 = vadd.xlane.f32.xlu1 %v2977_v30 }
 0xff0   : > { %v2979_v50 = vpop.xlane.xlu1 %2978 }
 0xff1   : > { %3854 = vrcp.f32 %v2979_v50 }
 0xffb   : > { %v3855_v24 = vpop.eup %3854 }
 0xffc   : > { %v2981_v21 = vmul.f32 %v3855_v24, %v3853_v55 }
 0xffe   : > { %2982 = vst.msk [vmem:[%s4224_s13] sm:$0x1] %vm2970_vm15, %v2981_v21 }
 0xfff PF: > { %s4903_s4 = sld [smem:[#allocation9_spill]]  ;;  %s4905_s3 = sld [smem:[#allocation37_spill]] }
0x1000   : > { %s2996_s9 = sshll.u32 %s4224_s13, 4  ;;  %s4907_s2 = sand.u32 1, %s3926_s25   ;;  %s2997_s9 = int_to_ptr.vmem [resolvable:$true] %s2996_s9 }
0x1001   : > { %s2984_s26 = scalar_lea.sflag [#allocation4], %s4907_s2  ;;  %s3856_s28 = scalar_lea.vmem %s2997_s9, 16 }
0x1002   : > { %p3857_p2 = scmp.ne.s32.totalorder %s2997_s9, %s3856_s28  ;;  %s3954_s27 = smov [#allocation3]  }
0x1003   : > { %s3860_s24 = sshll.u32 %s3954_s27, 4  ;;  %s3861_s24 = int_to_ptr.vmem [resolvable:$false] %s3860_s24 }
0x1004   : > { %p3858_p4 = pnand %p3857_p2, %p4114_p3  ;;  %s3862_s29 = scalar_lea.vmem %s3861_s24, 32 }
0x1005   : > { %s3354_s23 = sshll.u32 %s4903_s4, 4  ;;  %s4906_s8 = smov %s4905_s3 }
0x1006   : > { %s4749_s22 = scalar_lea.hbm %s4905_s3, %s3354_s23  ;;  %p3859_p5 = pneg %p3858_p4 }
0x1007   : > { %p3863_p6 = scmp.lt.s32.totalorder %s2997_s9, %s3861_s24  ;;  %p3864_p7 = scmp.lt.s32.totalorder %s3862_s29, %s3856_s28 }
0x1009   : > { %p3865_p8 = por %p3864_p7, %p3863_p6 }
0x100b   : > { %p3866_p10 = pnand %p3865_p8, %p3859_p5 }
0x100d   : > { %3869 = shalt.err (!%p3866_p10)
}
0x100e   : > { %s3870_s13 = scalar_lea.hbm %s4749_s22, 16  ;;  %s3874_s20 = scalar_lea.hbm %s4906_s8, 32 }
0x100f   : > { %p3871_p11 = scmp.ne.s32.totalorder %s4749_s22, %s3870_s13  ;;  %p3875_p0 = scmp.lt.u32.totalorder %s4749_s22, %s4906_s8 }
0x1010   : > { %p3876_p1 = scmp.lt.u32.totalorder %s3874_s20, %s3870_s13  ;;  %p3878_p4 = scmp.lt.u32.totalorder %s3870_s13, %s4749_s22 }
0x1011   : > { %p3872_p12 = pnand %p3871_p11, %p4114_p3 }
0x1012   : > { %p3877_p2 = por %p3876_p1, %p3875_p0 }
0x1013   : > { %p3873_p13 = pneg %p3872_p12 }
0x1014   : > { %p3879_p5 = por %p3878_p4, %p3877_p2 }
0x1016   : > { %p3880_p6 = pnand %p3879_p5, %p3873_p13 }
0x1018   : > { %3883 = shalt.err (!%p3880_p6)
}
0x1019   : > { %3663 = dma.vmem_to_hbm [thread:$0]  (%p4114_p3), %s2997_s9, 16, %s4749_s22, %s2984_s26  }
0x101a PF: > { %s4908_s6 = sld [smem:[#allocation12_spill]]  ;;  %s4909_s4 = sld [smem:[#allocation6_spill]] }
0x1020   : > { %p3669_p7 = scmp.ge.s32.totalorder %s4908_s6, 2  ;;  %s3008_s19 = sand.u32 1, %s4909_s4  }
0x1021   : > { %s3009_s21 = scalar_lea.sflag [#allocation4], %s3008_s19 }
0x1022   : > { %p3666_p8 = pnand %p3669_p7, %p4124_p9 }
0x1024   : > { %3917 = dma.done.wait (!%p3666_p8), %s3009_s21, 16  }
0x1025   : > { %3919 = vsyncadd (!%p3666_p8), %s3009_s21, 4294967280  ;;  %s34_s0 = sadd.s32 1, %s4908_s6   ;;  %s4911_s3 = sld [smem:[#allocation7_spill]] }
0x1026   : > { %p31_p10 = scmp.ge.s32.totalorder %s34_s0, 6   ;;  %s4912_s26 = sld [smem:[#allocation17_spill]] }
0x1027   : > { %s4913_s27 = sld [smem:[#allocation10_spill]]  ;;  %s4914_s1 = sld [smem:[#allocation11_spill]] }
0x1028   : > { %s4915_s28 = sld [smem:[#allocation13_spill]]  ;;  %s4916_s29 = sld [smem:[#allocation15_spill]] }
0x1029   : > { %s4917_s2 = smov %s3926_s25  ;;  %33 = sbr.rel (!%p31_p10) target bundleno = 21 (0x15), region = 202 }
0x102b   : > { %s4918_s25 = smov %s4911_s3 }
0x102d   : > { %s4919_s3 = smov %s4914_s1 }
0x1030   :  { %3013 = vsyncpa [#allocation4], 1 }
0x1031   :  { %3015 = vsyncpa [#allocation4 + $0x1], 1 }

</bundles_post_ra>
